<compile_context>
chip_gen: v7x
topology: tpu7x:2x2x1
jax: 0.10.0
libtpu: 0.0.40
codegen_flags: <defaults>
</compile_context>

<pallas_src>
import functools

import numpy as np
import jax
import jax.numpy as jnp
from jax.experimental import pallas as pl
from jax.experimental.pallas import tpu as pltpu


def _ego_attention_kernel(oth_ref, ego_ref, bias_ref, wall_ref, db_ref, rb_ref,
                          ssum_ref, wattn_ref, winv_ref, wc_ref,
                          out_ref, attn_ref, *, n_entities, feature_size):
    # Block shapes (one grid step == TB batch rows; everything is 2-D):
    #   oth_ref  : (TB, (N-1)*F) others, entity-major / feature-minor lanes
    #   ego_ref  : (TB, F)
    #   bias_ref : (TB, N)       additive mask bias (0 or -1e9)
    #   wall_ref : (NF, 3*NF)    fused [K | V | Q-replicated] block weights
    #   db_ref   : (NF, NF)      block-diag head-replication (head-sum) matrix
    #   rb_ref   : (N, NF)       bias -> entity-block broadcast
    #   ssum_ref : (NF, F)       sum-over-entities selector
    #   wattn_ref: (NF, H*N)     e -> attn numerator in (head, entity) order
    #   winv_ref : (F, H*N)      per-feature inv -> (head, entity) broadcast
    #   wc_ref   : (F, F)        combine weight (in, out layout)
    #   out_ref  : (TB, F)
    #   attn_ref : (TB, H*N)     head-major, entity-minor (lane dense)
    N = n_entities
    F = feature_size
    NF = N * F

    ego = ego_ref[...]                                    # (TB, F)
    oth = oth_ref[...]                                    # (TB, (N-1)*F)
    x_full = jnp.concatenate([ego, oth], axis=1)          # (TB, NF)

    # Single fused projection matmul: [K_all | V_all | Q replicated per entity].
    proj = jnp.dot(x_full, wall_ref[...], preferred_element_type=jnp.float32)
    k_full = proj[:, 0:NF]                                # (TB, NF)
    v_full = proj[:, NF:2 * NF]                           # (TB, NF)
    q_rep = proj[:, 2 * NF:]                              # (TB, NF) (scale folded in)

    # Head-replicated scores: s_rep[b, n*F + f] = score[b, n, head(f)].
    prod = q_rep * k_full
    s_rep = jnp.dot(prod, db_ref[...], preferred_element_type=jnp.float32)
    s_rep = s_rep + jnp.dot(bias_ref[...], rb_ref[...],
                            preferred_element_type=jnp.float32)

    # Softmax over entities, all at full lane width (exact per-head max).
    m = s_rep[:, 0:F]
    for n in range(1, N):
        m = jnp.maximum(m, s_rep[:, n * F:(n + 1) * F])   # (TB, F)
    e = jnp.exp(s_rep - jnp.concatenate([m] * N, axis=1)) # (TB, NF)
    denom = jnp.dot(e, ssum_ref[...], preferred_element_type=jnp.float32)  # (TB, F)
    inv = 1.0 / denom   # exact reciprocal: approx=True would not meet 1e-4 tolerance

    # Attention probabilities, lane-dense and already in final (h, n) order.
    attn_num = jnp.dot(e, wattn_ref[...], preferred_element_type=jnp.float32)
    inv_hn = jnp.dot(inv, winv_ref[...], preferred_element_type=jnp.float32)
    attn_ref[...] = attn_num * inv_hn                     # (TB, H*N)

    # Weighted value sum, combine projection, residual with ego.
    val = jnp.dot(e * v_full, ssum_ref[...],
                  preferred_element_type=jnp.float32) * inv                # (TB, F)
    combined = jnp.dot(val, wc_ref[...], preferred_element_type=jnp.float32)
    out_ref[...] = (combined + ego) * 0.5


def _round_up(x, m):
    return ((x + m - 1) // m) * m


def ego_attention_pallas(ego, others, params, heads, mask=None, *, block_b=512):
    """ego: (B, 1, F); others: (B, N-1, F); mask: optional (B, N) bool (True = masked)."""
    B, _, F = ego.shape
    NO = others.shape[1]
    N = NO + 1
    H = heads
    fh = F // H
    NF = N * F
    HN = H * N
    f32 = jnp.float32

    # Activations: no HBM concat of ego+others; these reshapes are metadata-only.
    ego2d = ego.reshape(B, F).astype(f32)
    oth2d = others.reshape(B, NO * F).astype(f32)
    if mask is None:
        bias = jnp.zeros((B, N), f32)
    else:
        bias = jnp.where(mask.reshape(B, N), jnp.float32(-1e9), jnp.float32(0.0))

    # Only tiny batches get padded (to 8 rows, for the (8,128) block rule); any
    # other ragged tail is handled by Pallas's masked edge block (rows beyond B
    # compute garbage locally and their stores are dropped).
    if B < 8:
        pad = 8 - B
        ego2d = jnp.pad(ego2d, ((0, pad), (0, 0)))
        oth2d = jnp.pad(oth2d, ((0, pad), (0, 0)))
        bias = jnp.pad(bias, ((0, pad), (0, 0)))
        Bt = 8
    else:
        Bt = B

    # Batch tile: multiple of 8, capped at block_b, and chosen so the parallel
    # grid axis has >= 2 steps whenever B allows it (keeps both v7x TCs busy).
    tb = min(block_b, max(8, _round_up((Bt + 1) // 2, 8)))
    grid = (Bt + tb - 1) // tb

    # --- constant (per-call) weights, fused / pre-transposed once in the wrapper ---
    wq_t = (params["query_ego"].T * np.float32(1.0 / np.sqrt(fh))).astype(f32)
    wk_t = params["key_all"].T.astype(f32)
    wv_t = params["value_all"].T.astype(f32)
    wc_t = params["attention_combine"].T.astype(f32)

    eyeN = jnp.eye(N, dtype=f32)
    ego_rows = jnp.zeros((N, N), f32).at[0, :].set(1.0)   # only entity 0 feeds Q
    w_all = jnp.concatenate(
        [jnp.kron(eyeN, wk_t), jnp.kron(eyeN, wv_t), jnp.kron(ego_rows, wq_t)],
        axis=1)                                            # (NF, 3*NF)

    head_of = np.arange(F) // fh
    d_head = (head_of[:, None] == head_of[None, :]).astype(np.float32)       # (F, F)
    db = jnp.asarray(np.kron(np.eye(N, dtype=np.float32), d_head))           # (NF, NF)
    rb = jnp.asarray(np.kron(np.eye(N, dtype=np.float32),
                             np.ones((1, F), np.float32)))                   # (N, NF)
    ssum = jnp.asarray(np.kron(np.ones((N, 1), np.float32),
                               np.eye(F, dtype=np.float32)))                 # (NF, F)
    wattn_np = np.zeros((NF, HN), np.float32)
    for n in range(N):
        for f in range(F):
            wattn_np[n * F + f, head_of[f] * N + n] = 1.0 / fh
    wattn = jnp.asarray(wattn_np)                                            # (NF, HN)
    sel = (head_of[:, None] == np.arange(H)[None, :]).astype(np.float32)     # (F, H)
    winv = jnp.asarray(np.kron(sel, np.ones((1, N), np.float32)) / fh)       # (F, HN)

    kernel = functools.partial(_ego_attention_kernel,
                               n_entities=N, feature_size=F)

    out, attn2d = pl.pallas_call(
        kernel,
        out_shape=(jax.ShapeDtypeStruct((Bt, F), f32),
                   jax.ShapeDtypeStruct((Bt, HN), f32)),
        grid=(grid,),
        in_specs=[
            pl.BlockSpec((tb, NO * F), lambda b: (b, 0)),   # others (flattened)
            pl.BlockSpec((tb, F), lambda b: (b, 0)),        # ego
            pl.BlockSpec((tb, N), lambda b: (b, 0)),        # additive mask bias
            pl.BlockSpec((NF, 3 * NF), lambda b: (0, 0)),   # fused [K|V|Qrep] weights
            pl.BlockSpec((NF, NF), lambda b: (0, 0)),       # head-replication matrix
            pl.BlockSpec((N, NF), lambda b: (0, 0)),        # bias broadcast
            pl.BlockSpec((NF, F), lambda b: (0, 0)),        # entity-sum selector
            pl.BlockSpec((NF, HN), lambda b: (0, 0)),       # attn (h, n) selector
            pl.BlockSpec((F, HN), lambda b: (0, 0)),        # inv (h, n) broadcast
            pl.BlockSpec((F, F), lambda b: (0, 0)),         # Wc^T
        ],
        out_specs=(
            pl.BlockSpec((tb, F), lambda b: (b, 0)),
            pl.BlockSpec((tb, HN), lambda b: (b, 0)),
        ),
        compiler_params=pltpu.CompilerParams(
            dimension_semantics=("parallel",),
            vmem_limit_bytes=32 * 1024 * 1024),
    )(oth2d, ego2d, bias, w_all, db, rb, ssum, wattn, winv, wc_t)

    result = out[:B]                                        # (B, F)
    attn_p = attn2d[:B].reshape(B, H, N)[:, :, None, :]     # pure reshape -> (B, H, 1, N)
    return result, attn_p


def ego_attention_ref(ego, others, params, heads, mask=None):
    """Pure-JAX reference mirroring the PyTorch forward exactly."""
    B, _, F = ego.shape
    N = others.shape[1] + 1
    fh = F // heads
    input_all = jnp.concatenate([ego.reshape(B, 1, F), others], axis=1)
    key_all = (input_all @ params["key_all"].T).reshape(B, N, heads, fh).transpose(0, 2, 1, 3)
    value_all = (input_all @ params["value_all"].T).reshape(B, N, heads, fh).transpose(0, 2, 1, 3)
    query_ego = (ego.reshape(B, 1, F) @ params["query_ego"].T).reshape(B, 1, heads, fh).transpose(0, 2, 1, 3)
    scores = query_ego @ key_all.transpose(0, 1, 3, 2) / np.sqrt(fh)
    if mask is not None:
        scores = jnp.where(mask.reshape(B, 1, 1, N), -1e9, scores)
    p = jax.nn.softmax(scores, axis=-1)
    val = p @ value_all
    result = (val.reshape(B, F) @ params["attention_combine"].T + ego.reshape(B, F)) / 2
    return result, p


if __name__ == "__main__":
    F, heads = 32, 4
    n_others = 7            # -> N = 8 entities
    N = n_others + 1

    keys = jax.random.split(jax.random.PRNGKey(0), 10)
    wscale = 1.0 / np.sqrt(F)   # deterministic synthetic Linear weights (out, in)
    params = {
        "query_ego": jax.random.normal(keys[0], (F, F), jnp.float32) * wscale,
        "key_all": jax.random.normal(keys[1], (F, F), jnp.float32) * wscale,
        "value_all": jax.random.normal(keys[2], (F, F), jnp.float32) * wscale,
        "attention_combine": jax.random.normal(keys[3], (F, F), jnp.float32) * wscale,
    }

    # Case 1: tiny batch (padded to 8 rows), no mask, single grid step.
    B1 = 2
    ego1 = jax.random.normal(keys[4], (B1, 1, F), jnp.float32)
    oth1 = jax.random.normal(keys[5], (B1, n_others, F), jnp.float32)
    r1, a1 = ego_attention_pallas(ego1, oth1, params, heads, mask=None)
    r1 = jax.block_until_ready(r1)
    a1 = jax.block_until_ready(a1)
    rr1, ra1 = ego_attention_ref(ego1, oth1, params, heads, mask=None)
    assert r1.shape == (B1, F)
    assert a1.shape == (B1, heads, 1, N)
    np.testing.assert_allclose(np.asarray(r1), np.asarray(rr1), rtol=1e-4, atol=1e-4)
    np.testing.assert_allclose(np.asarray(a1), np.asarray(ra1), rtol=1e-4, atol=1e-4)

    # Case 2: blocked batch grid with a masked ragged edge block + attention mask.
    B2 = 40
    ego2 = jax.random.normal(keys[6], (B2, 1, F), jnp.float32)
    oth2 = jax.random.normal(keys[7], (B2, n_others, F), jnp.float32)
    mask2 = jax.random.bernoulli(keys[8], 0.3, (B2, N))
    mask2 = mask2.at[:, 0].set(False)
    rr2, ra2 = ego_attention_ref(ego2, oth2, params, heads, mask=mask2)

    # 2a: explicit small tile -> 3 grid steps, last one partially out of bounds.
    r2, a2 = ego_attention_pallas(ego2, oth2, params, heads, mask=mask2, block_b=16)
    r2 = jax.block_until_ready(r2)
    a2 = jax.block_until_ready(a2)
    np.testing.assert_allclose(np.asarray(r2), np.asarray(rr2), rtol=1e-4, atol=1e-4)
    np.testing.assert_allclose(np.asarray(a2), np.asarray(ra2), rtol=1e-4, atol=1e-4)

    # 2b: default tile selection (>= 2 grid steps for the parallel axis).
    r3, a3 = ego_attention_pallas(ego2, oth2, params, heads, mask=mask2)
    r3 = jax.block_until_ready(r3)
    a3 = jax.block_until_ready(a3)
    np.testing.assert_allclose(np.asarray(r3), np.asarray(rr2), rtol=1e-4, atol=1e-4)
    np.testing.assert_allclose(np.asarray(a3), np.asarray(ra2), rtol=1e-4, atol=1e-4)

    print("KERNEL_OK")
</pallas_src>

<mosaic_0001>
module attributes {stable_mosaic.version = 11 : i64} {
  func.func @_ego_attention_kernel(%arg0: i32, %arg1: memref<8x224xf32, #tpu.memory_space<vmem>>, %arg2: memref<8x32xf32, #tpu.memory_space<vmem>>, %arg3: memref<8x8xf32, #tpu.memory_space<vmem>>, %arg4: memref<256x768xf32, #tpu.memory_space<vmem>>, %arg5: memref<256x256xf32, #tpu.memory_space<vmem>>, %arg6: memref<8x256xf32, #tpu.memory_space<vmem>>, %arg7: memref<256x32xf32, #tpu.memory_space<vmem>>, %arg8: memref<256x32xf32, #tpu.memory_space<vmem>>, %arg9: memref<32x32xf32, #tpu.memory_space<vmem>>, %arg10: memref<32x32xf32, #tpu.memory_space<vmem>>, %arg11: memref<8x32xf32, #tpu.memory_space<vmem>>, %arg12: memref<8x32xf32, #tpu.memory_space<vmem>>) attributes {dimension_semantics = [#tpu.dimension_semantics<parallel>], iteration_bounds = array<i64: 1>, scalar_prefetch = 0 : i64, scratch_operands = 0 : i64, tpu.core_type = #tpu.core_type<tc>, window_params = [{transform_indices = @transform_0, window_bounds = array<i64: 8, 224>}, {transform_indices = @transform_1, window_bounds = array<i64: 8, 32>}, {transform_indices = @transform_2, window_bounds = array<i64: 8, 8>}, {pipeline_mode = #tpu.pipeline_mode<synchronous>, transform_indices = @transform_3, window_bounds = array<i64: 256, 768>}, {pipeline_mode = #tpu.pipeline_mode<synchronous>, transform_indices = @transform_4, window_bounds = array<i64: 256, 256>}, {pipeline_mode = #tpu.pipeline_mode<synchronous>, transform_indices = @transform_5, window_bounds = array<i64: 8, 256>}, {pipeline_mode = #tpu.pipeline_mode<synchronous>, transform_indices = @transform_6, window_bounds = array<i64: 256, 32>}, {pipeline_mode = #tpu.pipeline_mode<synchronous>, transform_indices = @transform_7, window_bounds = array<i64: 256, 32>}, {pipeline_mode = #tpu.pipeline_mode<synchronous>, transform_indices = @transform_8, window_bounds = array<i64: 32, 32>}, {pipeline_mode = #tpu.pipeline_mode<synchronous>, transform_indices = @transform_9, window_bounds = array<i64: 32, 32>}, {transform_indices = @transform_10, window_bounds = array<i64: 8, 32>}, {transform_indices = @transform_11, window_bounds = array<i64: 8, 32>}]} {
    %c0 = arith.constant 0 : index
    %c0_0 = arith.constant 0 : index
    %0 = vector.load %arg2[%c0, %c0_0] : memref<8x32xf32, #tpu.memory_space<vmem>>, vector<8x32xf32>
    %c0_1 = arith.constant 0 : index
    %c0_2 = arith.constant 0 : index
    %1 = vector.load %arg1[%c0_1, %c0_2] : memref<8x224xf32, #tpu.memory_space<vmem>>, vector<8x224xf32>
    %2 = tpu.concatenate %0, %1 in 1 : vector<8x32xf32>, vector<8x224xf32> -> vector<8x256xf32>
    %c0_3 = arith.constant 0 : index
    %c0_4 = arith.constant 0 : index
    %3 = vector.load %arg4[%c0_3, %c0_4] : memref<256x768xf32, #tpu.memory_space<vmem>>, vector<256x768xf32>
    %cst = arith.constant dense<0.000000e+00> : vector<8x768xf32>
    %4 = tpu.matmul %2, %3, %cst {dimension_numbers = #tpu.dot_dimension_numbers<[1], [0], [0], [1], [0, 0, 1, 1], [], []>} : vector<8x256xf32>, vector<256x768xf32>, vector<8x768xf32> -> vector<8x768xf32>
    %5 = vector.extract_strided_slice %4 {offsets = [0, 0], sizes = [8, 256], strides = [1, 1]} : vector<8x768xf32> to vector<8x256xf32>
    %6 = vector.extract_strided_slice %4 {offsets = [0, 256], sizes = [8, 256], strides = [1, 1]} : vector<8x768xf32> to vector<8x256xf32>
    %7 = vector.extract_strided_slice %4 {offsets = [0, 512], sizes = [8, 256], strides = [1, 1]} : vector<8x768xf32> to vector<8x256xf32>
    %8 = arith.mulf %7, %5 : vector<8x256xf32>
    %c0_5 = arith.constant 0 : index
    %c0_6 = arith.constant 0 : index
    %9 = vector.load %arg5[%c0_5, %c0_6] : memref<256x256xf32, #tpu.memory_space<vmem>>, vector<256x256xf32>
    %cst_7 = arith.constant dense<0.000000e+00> : vector<8x256xf32>
    %10 = tpu.matmul %8, %9, %cst_7 {dimension_numbers = #tpu.dot_dimension_numbers<[1], [0], [0], [1], [0, 0, 1, 1], [], []>} : vector<8x256xf32>, vector<256x256xf32>, vector<8x256xf32> -> vector<8x256xf32>
    %c0_8 = arith.constant 0 : index
    %c0_9 = arith.constant 0 : index
    %11 = vector.load %arg3[%c0_8, %c0_9] : memref<8x8xf32, #tpu.memory_space<vmem>>, vector<8x8xf32>
    %c0_10 = arith.constant 0 : index
    %c0_11 = arith.constant 0 : index
    %12 = vector.load %arg6[%c0_10, %c0_11] : memref<8x256xf32, #tpu.memory_space<vmem>>, vector<8x256xf32>
    %cst_12 = arith.constant dense<0.000000e+00> : vector<8x256xf32>
    %13 = tpu.matmul %11, %12, %cst_12 {dimension_numbers = #tpu.dot_dimension_numbers<[1], [0], [0], [1], [0, 0, 1, 1], [], []>} : vector<8x8xf32>, vector<8x256xf32>, vector<8x256xf32> -> vector<8x256xf32>
    %14 = arith.addf %10, %13 : vector<8x256xf32>
    %15 = vector.extract_strided_slice %14 {offsets = [0, 0], sizes = [8, 32], strides = [1, 1]} : vector<8x256xf32> to vector<8x32xf32>
    %16 = vector.extract_strided_slice %14 {offsets = [0, 32], sizes = [8, 32], strides = [1, 1]} : vector<8x256xf32> to vector<8x32xf32>
    %17 = arith.maximumf %15, %16 : vector<8x32xf32>
    %18 = vector.extract_strided_slice %14 {offsets = [0, 64], sizes = [8, 32], strides = [1, 1]} : vector<8x256xf32> to vector<8x32xf32>
    %19 = arith.maximumf %17, %18 : vector<8x32xf32>
    %20 = vector.extract_strided_slice %14 {offsets = [0, 96], sizes = [8, 32], strides = [1, 1]} : vector<8x256xf32> to vector<8x32xf32>
    %21 = arith.maximumf %19, %20 : vector<8x32xf32>
    %22 = vector.extract_strided_slice %14 {offsets = [0, 128], sizes = [8, 32], strides = [1, 1]} : vector<8x256xf32> to vector<8x32xf32>
    %23 = arith.maximumf %21, %22 : vector<8x32xf32>
    %24 = vector.extract_strided_slice %14 {offsets = [0, 160], sizes = [8, 32], strides = [1, 1]} : vector<8x256xf32> to vector<8x32xf32>
    %25 = arith.maximumf %23, %24 : vector<8x32xf32>
    %26 = vector.extract_strided_slice %14 {offsets = [0, 192], sizes = [8, 32], strides = [1, 1]} : vector<8x256xf32> to vector<8x32xf32>
    %27 = arith.maximumf %25, %26 : vector<8x32xf32>
    %28 = vector.extract_strided_slice %14 {offsets = [0, 224], sizes = [8, 32], strides = [1, 1]} : vector<8x256xf32> to vector<8x32xf32>
    %29 = arith.maximumf %27, %28 : vector<8x32xf32>
    %30 = tpu.concatenate %29, %29, %29, %29, %29, %29, %29, %29 in 1 : vector<8x32xf32>, vector<8x32xf32>, vector<8x32xf32>, vector<8x32xf32>, vector<8x32xf32>, vector<8x32xf32>, vector<8x32xf32>, vector<8x32xf32> -> vector<8x256xf32>
    %31 = arith.subf %14, %30 : vector<8x256xf32>
    %32 = math.exp %31 : vector<8x256xf32>
    %c0_13 = arith.constant 0 : index
    %c0_14 = arith.constant 0 : index
    %33 = vector.load %arg7[%c0_13, %c0_14] : memref<256x32xf32, #tpu.memory_space<vmem>>, vector<256x32xf32>
    %cst_15 = arith.constant dense<0.000000e+00> : vector<8x32xf32>
    %34 = tpu.matmul %32, %33, %cst_15 {dimension_numbers = #tpu.dot_dimension_numbers<[1], [0], [0], [1], [0, 0, 1, 1], [], []>} : vector<8x256xf32>, vector<256x32xf32>, vector<8x32xf32> -> vector<8x32xf32>
    %cst_16 = arith.constant 1.000000e+00 : f32
    %35 = vector.broadcast %cst_16 : f32 to vector<8x32xf32>
    %36 = arith.divf %35, %34 : vector<8x32xf32>
    %c0_17 = arith.constant 0 : index
    %c0_18 = arith.constant 0 : index
    %37 = vector.load %arg8[%c0_17, %c0_18] : memref<256x32xf32, #tpu.memory_space<vmem>>, vector<256x32xf32>
    %cst_19 = arith.constant dense<0.000000e+00> : vector<8x32xf32>
    %38 = tpu.matmul %32, %37, %cst_19 {dimension_numbers = #tpu.dot_dimension_numbers<[1], [0], [0], [1], [0, 0, 1, 1], [], []>} : vector<8x256xf32>, vector<256x32xf32>, vector<8x32xf32> -> vector<8x32xf32>
    %c0_20 = arith.constant 0 : index
    %c0_21 = arith.constant 0 : index
    %39 = vector.load %arg9[%c0_20, %c0_21] : memref<32x32xf32, #tpu.memory_space<vmem>>, vector<32x32xf32>
    %cst_22 = arith.constant dense<0.000000e+00> : vector<8x32xf32>
    %40 = tpu.matmul %36, %39, %cst_22 {dimension_numbers = #tpu.dot_dimension_numbers<[1], [0], [0], [1], [0, 0, 1, 1], [], []>} : vector<8x32xf32>, vector<32x32xf32>, vector<8x32xf32> -> vector<8x32xf32>
    %41 = arith.mulf %38, %40 : vector<8x32xf32>
    %c0_23 = arith.constant 0 : index
    %c0_24 = arith.constant 0 : index
    %42 = vector.load %arg12[%c0_23, %c0_24] : memref<8x32xf32, #tpu.memory_space<vmem>>, vector<8x32xf32>
    tpu.vector_store %arg12[%c0_23, %c0_24], %41 {strides = array<i32>} : memref<8x32xf32, #tpu.memory_space<vmem>>, vector<8x32xf32>,
    %43 = arith.mulf %32, %6 : vector<8x256xf32>
    %c0_25 = arith.constant 0 : index
    %c0_26 = arith.constant 0 : index
    %44 = vector.load %arg7[%c0_25, %c0_26] : memref<256x32xf32, #tpu.memory_space<vmem>>, vector<256x32xf32>
    %cst_27 = arith.constant dense<0.000000e+00> : vector<8x32xf32>
    %45 = tpu.matmul %43, %44, %cst_27 {dimension_numbers = #tpu.dot_dimension_numbers<[1], [0], [0], [1], [0, 0, 1, 1], [], []>} : vector<8x256xf32>, vector<256x32xf32>, vector<8x32xf32> -> vector<8x32xf32>
    %46 = arith.mulf %45, %36 : vector<8x32xf32>
    %c0_28 = arith.constant 0 : index
    %c0_29 = arith.constant 0 : index
    %47 = vector.load %arg10[%c0_28, %c0_29] : memref<32x32xf32, #tpu.memory_space<vmem>>, vector<32x32xf32>
    %cst_30 = arith.constant dense<0.000000e+00> : vector<8x32xf32>
    %48 = tpu.matmul %46, %47, %cst_30 {dimension_numbers = #tpu.dot_dimension_numbers<[1], [0], [0], [1], [0, 0, 1, 1], [], []>} : vector<8x32xf32>, vector<32x32xf32>, vector<8x32xf32> -> vector<8x32xf32>
    %49 = arith.addf %48, %0 : vector<8x32xf32>
    %cst_31 = arith.constant 5.000000e-01 : f32
    %50 = vector.broadcast %cst_31 : f32 to vector<8x32xf32>
    %51 = arith.mulf %49, %50 : vector<8x32xf32>
    %c0_32 = arith.constant 0 : index
    %c0_33 = arith.constant 0 : index
    %52 = vector.load %arg11[%c0_32, %c0_33] : memref<8x32xf32, #tpu.memory_space<vmem>>, vector<8x32xf32>
    tpu.vector_store %arg11[%c0_32, %c0_33], %51 {strides = array<i32>} : memref<8x32xf32, #tpu.memory_space<vmem>>, vector<8x32xf32>,
    return
  }
  func.func @transform_0(%arg0: i32) -> (i32, i32) {
    %c0_i32 = arith.constant 0 : i32
    %c0_i32_0 = arith.constant 0 : i32
    return %arg0, %c0_i32 : i32, i32
  }
  func.func @transform_1(%arg0: i32) -> (i32, i32) {
    %c0_i32 = arith.constant 0 : i32
    %c0_i32_0 = arith.constant 0 : i32
    return %arg0, %c0_i32 : i32, i32
  }
  func.func @transform_2(%arg0: i32) -> (i32, i32) {
    %c0_i32 = arith.constant 0 : i32
    %c0_i32_0 = arith.constant 0 : i32
    return %arg0, %c0_i32 : i32, i32
  }
  func.func @transform_3(%arg0: i32) -> (i32, i32) {
    %c0_i32 = arith.constant 0 : i32
    %c0_i32_0 = arith.constant 0 : i32
    %c0_i32_1 = arith.constant 0 : i32
    return %c0_i32, %c0_i32_0 : i32, i32
  }
  func.func @transform_4(%arg0: i32) -> (i32, i32) {
    %c0_i32 = arith.constant 0 : i32
    %c0_i32_0 = arith.constant 0 : i32
    %c0_i32_1 = arith.constant 0 : i32
    return %c0_i32, %c0_i32_0 : i32, i32
  }
  func.func @transform_5(%arg0: i32) -> (i32, i32) {
    %c0_i32 = arith.constant 0 : i32
    %c0_i32_0 = arith.constant 0 : i32
    %c0_i32_1 = arith.constant 0 : i32
    return %c0_i32, %c0_i32_0 : i32, i32
  }
  func.func @transform_6(%arg0: i32) -> (i32, i32) {
    %c0_i32 = arith.constant 0 : i32
    %c0_i32_0 = arith.constant 0 : i32
    %c0_i32_1 = arith.constant 0 : i32
    return %c0_i32, %c0_i32_0 : i32, i32
  }
  func.func @transform_7(%arg0: i32) -> (i32, i32) {
    %c0_i32 = arith.constant 0 : i32
    %c0_i32_0 = arith.constant 0 : i32
    %c0_i32_1 = arith.constant 0 : i32
    return %c0_i32, %c0_i32_0 : i32, i32
  }
  func.func @transform_8(%arg0: i32) -> (i32, i32) {
    %c0_i32 = arith.constant 0 : i32
    %c0_i32_0 = arith.constant 0 : i32
    %c0_i32_1 = arith.constant 0 : i32
    return %c0_i32, %c0_i32_0 : i32, i32
  }
  func.func @transform_9(%arg0: i32) -> (i32, i32) {
    %c0_i32 = arith.constant 0 : i32
    %c0_i32_0 = arith.constant 0 : i32
    %c0_i32_1 = arith.constant 0 : i32
    return %c0_i32, %c0_i32_0 : i32, i32
  }
  func.func @transform_10(%arg0: i32) -> (i32, i32) {
    %c0_i32 = arith.constant 0 : i32
    %c0_i32_0 = arith.constant 0 : i32
    return %arg0, %c0_i32 : i32, i32
  }
  func.func @transform_11(%arg0: i32) -> (i32, i32) {
    %c0_i32 = arith.constant 0 : i32
    %c0_i32_0 = arith.constant 0 : i32
    return %arg0, %c0_i32 : i32, i32
  }
}

</mosaic_0001>

<bundles_post_ra>
// kernel: tpu_custom_call.1
= control target key start
LH: loop header
LB: loop body
LE: loop exit
PB: predicated region body
PF: predicated region fallthrough
CT: control target
= control target key end

     0   :  { %17 = vsyncpa [#allocation3], 0  ;;  %s2599_s0 = inlined_call_operand.vmem [shape: f32[8,224], index: 0, kind: input, shape index: {}]   ;;  %s2600_s1 = inlined_call_operand.hbm [shape: f32[8,32], index: 1, kind: input, shape index: {}]   ;;  %s2601_s2 = inlined_call_operand.hbm [shape: f32[8,8], index: 2, kind: input, shape index: {}]   ;;  %s2602_s3 = inlined_call_operand.hbm [shape: f32[256,768], index: 3, kind: input, shape index: {}]   ;;  %s2603_s4 = inlined_call_operand.vmem [shape: f32[256,256], index: 4, kind: input, shape index: {}]   ;;  %s2604_s5 = inlined_call_operand.hbm [shape: f32[8,256], index: 5, kind: input, shape index: {}]   ;;  %s2605_s6 = inlined_call_operand.vmem [shape: f32[256,32], index: 6, kind: input, shape index: {}]   ;;  %s2606_s7 = inlined_call_operand.vmem [shape: f32[256,32], index: 7, kind: input, shape index: {}]   ;;  %s2607_s8 = inlined_call_operand.vmem [shape: f32[32,32], index: 8, kind: input, shape index: {}]   ;;  %s2608_s9 = inlined_call_operand.vmem [shape: f32[32,32], index: 9, kind: input, shape index: {}]   ;;  %s2609_s10 = inlined_call_operand.hbm [shape: f32[8,32], index: 10, kind: output, shape index: {0}]   ;;  %s2610_s11 = inlined_call_operand.hbm [shape: f32[8,32], index: 11, kind: output, shape index: {1}]  }
   0x1   :  { %18 = vsyncpa [#allocation6], 0 }
   0x2   :  { %19 = vsyncpa [#allocation9], 0 }
   0x3   :  { %20 = vsyncpa [#allocation4], 0 }
   0x4   :  { %21 = vsyncpa [#allocation12], 0  ;;  %s1944_s17 = smov [#allocation5]   ;;  %s1945_s19 = smov [#allocation2]  }
   0x5   :  { %s40_s18 = sshll.u32 %s1944_s17, 4  ;;  %s30_s20 = sshll.u32 %s1945_s19, 4  ;;  %s41_s18 = int_to_ptr.vmem [resolvable:$true] %s40_s18  ;;  %s31_s20 = int_to_ptr.vmem [resolvable:$true] %s30_s20 }
   0x6   :  { %s1802_s23 = scalar_lea.hbm %s2601_s2, 128 }
   0x7   :  { %p1803_p0 = scmp.ne.s32.totalorder %s2601_s2, %s1802_s23  ;;  %p1806_p1 = scmp.lt.u32.totalorder %s1802_s23, %s2601_s2 }
   0x9   :  { %p1808_p2 = pnand %p1806_p1, %p1803_p0 }
   0xb   :  { %1811 = shalt.err (!%p1808_p2)
}
   0xc   :  { %s1812_s28 = scalar_lea.vmem %s41_s18, 128  ;;  %p1817_p4 = scmp.lt.s32.totalorder %s41_s18, %s41_s18 }
   0xd   :  { %p1813_p3 = scmp.ne.s32.totalorder %s41_s18, %s1812_s28  ;;  %p1818_p5 = scmp.lt.s32.totalorder %s1812_s28, %s1812_s28 }
   0xf   :  { %p1819_p6 = por %p1818_p5, %p1817_p4 }
  0x11   :  { %p1820_p7 = pnand %p1819_p6, %p1813_p3 }
  0x13   :  { %1823 = shalt.err (!%p1820_p7)
}
  0x14   :  { %43 = dma.hbm_to_vmem [thread:$0]  %s2601_s2, 128, %s41_s18, [#allocation6]  }
  0x15   :  { %s1824_s14 = scalar_lea.hbm %s2600_s1, 128 }
  0x16   :  { %p1825_p8 = scmp.ne.s32.totalorder %s2600_s1, %s1824_s14  ;;  %p1828_p9 = scmp.lt.u32.totalorder %s1824_s14, %s2600_s1 }
  0x18   :  { %p1830_p10 = pnand %p1828_p9, %p1825_p8 }
  0x1a   :  { %1833 = shalt.err (!%p1830_p10)
}
  0x1b   :  { %s1834_s21 = scalar_lea.vmem %s31_s20, 128  ;;  %p1839_p12 = scmp.lt.s32.totalorder %s31_s20, %s31_s20 }
  0x1c   :  { %p1835_p11 = scmp.ne.s32.totalorder %s31_s20, %s1834_s21  ;;  %p1840_p13 = scmp.lt.s32.totalorder %s1834_s21, %s1834_s21 }
  0x1e   :  { %p1841_p0 = por %p1840_p13, %p1839_p12 }
  0x20   :  { %p1842_p1 = pnand %p1841_p0, %p1835_p11 }
  0x22   :  { %1845 = shalt.err (!%p1842_p1)
}
  0x23   :  { %33 = dma.hbm_to_vmem [thread:$0]  %s2600_s1, 128, %s31_s20, [#allocation3]  }
  0x24   :  { %s1946_s22 = smov [#allocation7]   ;;  %s1846_s26 = scalar_lea.hbm %s2602_s3, 24576 }
  0x25   :  { %s49_s23 = sshll.u32 %s1946_s22, 4  ;;  %p1847_p2 = scmp.ne.s32.totalorder %s2602_s3, %s1846_s26  ;;  %s50_s23 = int_to_ptr.vmem [resolvable:$true] %s49_s23 }
  0x26   :  { %p1850_p3 = scmp.lt.u32.totalorder %s1846_s26, %s2602_s3 }
  0x28   :  { %p1852_p4 = pnand %p1850_p3, %p1847_p2 }
  0x2a   :  { %1855 = shalt.err (!%p1852_p4)
}
  0x2b   :  { %s1856_s12 = scalar_lea.vmem %s50_s23, 24576  ;;  %p1861_p6 = scmp.lt.s32.totalorder %s50_s23, %s50_s23 }
  0x2c   :  { %p1857_p5 = scmp.ne.s32.totalorder %s50_s23, %s1856_s12  ;;  %p1862_p7 = scmp.lt.s32.totalorder %s1856_s12, %s1856_s12 }
  0x2e   :  { %p1863_p8 = por %p1862_p7, %p1861_p6 }
  0x30   :  { %p1864_p9 = pnand %p1863_p8, %p1857_p5 }
  0x32   :  { %1867 = shalt.err (!%p1864_p9)
}
  0x33   :  { %s1947_s1 = smov 768   ;;  %s1948_s20 = smov 48  }
  0x34   :  { %55 = dma.hbm_to_vmem [thread:$0]  %s2602_s3, 24576, %s50_s23, [#allocation6], %s1947_s1, %s1947_s1, %s1948_s20  }
  0x35   :  { %s1949_s15 = smov [#allocation8]   ;;  %s1868_s21 = scalar_lea.hbm %s2604_s5, 256 }
  0x36   :  { %s64_s16 = sshll.u32 %s1949_s15, 4  ;;  %p1869_p10 = scmp.ne.s32.totalorder %s2604_s5, %s1868_s21  ;;  %s65_s16 = int_to_ptr.vmem [resolvable:$true] %s64_s16 }
  0x37   :  { %p1872_p11 = scmp.lt.u32.totalorder %s1868_s21, %s2604_s5 }
  0x39   :  { %p1874_p12 = pnand %p1872_p11, %p1869_p10 }
  0x3b   :  { %1877 = shalt.err (!%p1874_p12)
}
  0x3c   :  { %s1878_s25 = scalar_lea.vmem %s65_s16, 256  ;;  %p1883_p0 = scmp.lt.s32.totalorder %s65_s16, %s65_s16 }
  0x3d   :  { %p1879_p13 = scmp.ne.s32.totalorder %s65_s16, %s1878_s25  ;;  %p1884_p1 = scmp.lt.s32.totalorder %s1878_s25, %s1878_s25 }
  0x3f   :  { %p1885_p2 = por %p1884_p1, %p1883_p0 }
  0x41   :  { %p1886_p3 = pnand %p1885_p2, %p1879_p13 }
  0x43   :  { %1889 = shalt.err (!%p1886_p3)
}
  0x44   :  { %67 = dma.hbm_to_vmem [thread:$0]  %s2604_s5, 256, %s65_s16, [#allocation9]  }
  0x45   :  { %1934 = dma.done.wait [#allocation3], 128  }
  0x46   :  { %1935 = vsyncadd [#allocation3], 4294967168 }
  0x47   :  { %1936 = dma.done.wait [#allocation6], 24704  }
  0x48   :  { %1937 = vsyncadd [#allocation6], 4294942592 }
  0x49   :  { %1938 = dma.done.wait [#allocation9], 256  }
  0x4a   :  { %1939 = vsyncadd [#allocation9], 4294967040  ;;  %v89_v0 = vld [vmem:[%s2599_s0] sm:$0xff]  ;;  %v90_v1 = vld [vmem:[%s2599_s0 + $0x8] sm:$0xff]  ;;  %s1950_s5 = smov 32   ;;  %vm97_vm0 = vcmask 261120  }
  0x4b   :  { %v103_v2 = vld [vmem:[#allocation7 + $0x8] sm:$0xff]  ;;  %v1790_v3 = vpack.i.bf16 %v90_v1, %v89_v0  ;;  %v109_v4 = vld [vmem:[#allocation7 + $0x38] sm:$0xff]  ;;  %v102_v5 = vld [vmem:[#allocation7] sm:$0xff]  ;;  %vm576_vm1 = vcmask 64512   ;;  %s1953_s18 = smov 96   ;;  %vm760_vm2 = vcmask 523264  }
  0x4c   :  { %v108_v6 = vld [vmem:[#allocation7 + $0x30] sm:$0xff]  ;;  %v1410_v7 = vpack.c.bf16 %v109_v4, %v103_v2  ;;  %v105_v9 = vld [vmem:[#allocation7 + $0x18] sm:$0xff]  ;;  %v111_v10 = vld [vmem:[#allocation7 + $0x48] sm:$0xff]  ;;  %vm762_vm3 = vcmask 785408   ;;  %vm1955_vm4 = vmmov 0   ;;  %s1956_s27 = smov [#allocation11]  }
  0x4d   :  { %v1412_v8 = vpack.c.bf16 %v108_v6, %v102_v5  ;;  %v104_v11 = vld [vmem:[#allocation7 + $0x10] sm:$0xff]  ;;  %1791 = vrot.lane.b32.xlu0 %v1790_v3, %s1950_s5  ;;  %v1474_v12 = vpack.c.bf16 %v111_v10, %v105_v9  ;;  %v110_v13 = vld [vmem:[#allocation7 + $0x40] sm:$0xff]  ;;  %v115_v14 = vld [vmem:[#allocation7 + $0x68] sm:$0xff]  ;;  %s1255_s28 = sshll.u32 %s1956_s27, 4  ;;  %s1256_s28 = int_to_ptr.vmem [resolvable:$true] %s1255_s28 }
  0x4e   :  { %v121_v15 = vld [vmem:[#allocation7 + $0x98] sm:$0xff]  ;;  %1411 = vmatprep.subr.bf16.mxu0 %v1410_v7  ;;  %v1476_v16 = vpack.c.bf16 %v110_v13, %v104_v11  ;;  %v114_v18 = vld [vmem:[#allocation7 + $0x60] sm:$0xff]  ;;  %v120_v19 = vld [vmem:[#allocation7 + $0x90] sm:$0xff]  ;;  %p1895_p5 = scmp.lt.s32.totalorder %s1256_s28, %s1256_s28 }
  0x4f   :  { %v1414_v17 = vpack.c.bf16 %v121_v15, %v115_v14  ;;  %v117_v20 = vld [vmem:[#allocation7 + $0x78] sm:$0xff]  ;;  %1413 = vmatpush1.bf16.msra.mxu0 %v1412_v8  ;;  %1475 = vmatprep.subr.bf16.mxu1 %v1474_v12  ;;  %v1416_v21 = vpack.c.bf16 %v120_v19, %v114_v18  ;;  %v123_v22 = vld [vmem:[#allocation7 + $0xa8] sm:$0xff]  ;;  %v116_v23 = vld [vmem:[#allocation7 + $0x70] sm:$0xff] }
  0x50   :  { %v122_v24 = vld [vmem:[#allocation7 + $0xa0] sm:$0xff]  ;;  %1477 = vmatpush1.bf16.msra.mxu1 %v1476_v16  ;;  %v1478_v25 = vpack.c.bf16 %v123_v22, %v117_v20  ;;  %v127_v27 = vld [vmem:[#allocation7 + $0xc8] sm:$0xff]  ;;  %v133_v28 = vld [vmem:[#allocation7 + $0xf8] sm:$0xff] }
  0x51   :  { %1415 = vmatprep.subr.bf16.mxu0 %v1414_v17  ;;  %v1480_v26 = vpack.c.bf16 %v122_v24, %v116_v23  ;;  %v126_v29 = vld [vmem:[#allocation7 + $0xc0] sm:$0xff]  ;;  %v1418_v30 = vpack.c.bf16 %v133_v28, %v127_v27  ;;  %v132_v31 = vld [vmem:[#allocation7 + $0xf0] sm:$0xff]  ;;  %v129_v32 = vld [vmem:[#allocation7 + $0xd8] sm:$0xff] }
  0x52   :  { %v135_v33 = vld [vmem:[#allocation7 + $0x108] sm:$0xff]  ;;  %1479 = vmatprep.subr.bf16.mxu1 %v1478_v25  ;;  %v128_v35 = vld [vmem:[#allocation7 + $0xd0] sm:$0xff]  ;;  %v134_v36 = vld [vmem:[#allocation7 + $0x100] sm:$0xff]  ;;  %v1420_v38 = vpack.c.bf16 %v132_v31, %v126_v29 }
  0x53   :  { %v1482_v34 = vpack.c.bf16 %v135_v33, %v129_v32  ;;  %v139_v37 = vld [vmem:[#allocation7 + $0x128] sm:$0xff]  ;;  %1417 = vmatpush1.bf16.msra.mxu0 %v1416_v21  ;;  %v145_v39 = vld [vmem:[#allocation7 + $0x158] sm:$0xff]  ;;  %v138_v40 = vld [vmem:[#allocation7 + $0x120] sm:$0xff]  ;;  %v1484_v42 = vpack.c.bf16 %v134_v36, %v128_v35 }
  0x54   :  { %v144_v41 = vld [vmem:[#allocation7 + $0x150] sm:$0xff]  ;;  %1481 = vmatpush1.bf16.msra.mxu1 %v1480_v26  ;;  %1419 = vmatprep.subr.bf16.mxu0 %v1418_v30  ;;  %v1422_v43 = vpack.c.bf16 %v145_v39, %v139_v37  ;;  %v141_v44 = vld [vmem:[#allocation7 + $0x138] sm:$0xff]  ;;  %v147_v45 = vld [vmem:[#allocation7 + $0x168] sm:$0xff] }
  0x55   :  { %v140_v46 = vld [vmem:[#allocation7 + $0x130] sm:$0xff]  ;;  %1483 = vmatprep.subr.bf16.mxu1 %v1482_v34  ;;  %v1486_v47 = vpack.c.bf16 %v147_v45, %v141_v44  ;;  %v146_v48 = vld [vmem:[#allocation7 + $0x160] sm:$0xff]  ;;  %v151_v49 = vld [vmem:[#allocation7 + $0x188] sm:$0xff]  ;;  %v1424_v52 = vpack.c.bf16 %v144_v41, %v138_v40 }
  0x56   :  { %v157_v50 = vld [vmem:[#allocation7 + $0x1b8] sm:$0xff]  ;;  %v159_v53 = vld [vmem:[#allocation7 + $0x1c8] sm:$0xff]  ;;  %v1488_v54 = vpack.c.bf16 %v146_v48, %v140_v46  ;;  %v150_v56 = vld [vmem:[#allocation7 + $0x180] sm:$0xff] }
  0x57   :  { %v153_v51 = vld [vmem:[#allocation7 + $0x198] sm:$0xff]  ;;  %1421 = vmatpush1.bf16.msra.mxu0 %v1420_v38  ;;  %v1426_v55 = vpack.c.bf16 %v157_v50, %v151_v49  ;;  %v156_v57 = vld [vmem:[#allocation7 + $0x1b0] sm:$0xff]  ;;  %v158_v60 = vld [vmem:[#allocation7 + $0x1c0] sm:$0xff] }
  0x58   :  { %1485 = vmatpush1.bf16.msra.mxu1 %v1484_v42  ;;  %1423 = vmatprep.subr.bf16.mxu0 %v1422_v43  ;;  %v152_v58 = vld [vmem:[#allocation7 + $0x190] sm:$0xff]  ;;  %v1490_v59 = vpack.c.bf16 %v159_v53, %v153_v51  ;;  %v163_v61 = vld [vmem:[#allocation7 + $0x1e8] sm:$0xff]  ;;  %v169_v62 = vld [vmem:[#allocation7 + $0x218] sm:$0xff]  ;;  %v1428_v1 = vpack.c.bf16 %v156_v57, %v150_v56 }
  0x59   :  { %1487 = vmatprep.subr.bf16.mxu1 %v1486_v47  ;;  %v165_v63 = vld [vmem:[#allocation7 + $0x1f8] sm:$0xff]  ;;  %v171_v0 = vld [vmem:[#allocation7 + $0x228] sm:$0xff]  ;;  %v1492_v2 = vpack.c.bf16 %v158_v60, %v152_v58  ;;  %v1430_v3 = vpack.c.bf16 %v169_v62, %v163_v61  ;;  %v162_v4 = vld [vmem:[#allocation7 + $0x1e0] sm:$0xff] }
  0x5a   :  { %v168_v5 = vld [vmem:[#allocation7 + $0x210] sm:$0xff]  ;;  %v1494_v7 = vpack.c.bf16 %v171_v0, %v165_v63  ;;  %v170_v8 = vld [vmem:[#allocation7 + $0x220] sm:$0xff]  ;;  %v175_v9 = vld [vmem:[#allocation7 + $0x248] sm:$0xff] }
  0x5b   :  { %1425 = vmatpush1.bf16.msra.mxu0 %v1424_v52  ;;  %v164_v6 = vld [vmem:[#allocation7 + $0x1f0] sm:$0xff]  ;;  %v181_v10 = vld [vmem:[#allocation7 + $0x278] sm:$0xff]  ;;  %v183_v12 = vld [vmem:[#allocation7 + $0x288] sm:$0xff]  ;;  %v1432_v13 = vpack.c.bf16 %v168_v5, %v162_v4 }
  0x5c   :  { %1489 = vmatpush1.bf16.msra.mxu1 %v1488_v54  ;;  %1427 = vmatprep.subr.bf16.mxu0 %v1426_v55  ;;  %v177_v11 = vld [vmem:[#allocation7 + $0x258] sm:$0xff]  ;;  %v1496_v14 = vpack.c.bf16 %v170_v8, %v164_v6  ;;  %v1434_v15 = vpack.c.bf16 %v181_v10, %v175_v9  ;;  %v174_v16 = vld [vmem:[#allocation7 + $0x240] sm:$0xff]  ;;  %v180_v17 = vld [vmem:[#allocation7 + $0x270] sm:$0xff] }
  0x5d   :  { %1491 = vmatprep.subr.bf16.mxu1 %v1490_v59  ;;  %v176_v18 = vld [vmem:[#allocation7 + $0x250] sm:$0xff]  ;;  %v1498_v19 = vpack.c.bf16 %v183_v12, %v177_v11  ;;  %v182_v20 = vld [vmem:[#allocation7 + $0x280] sm:$0xff]  ;;  %v187_v21 = vld [vmem:[#allocation7 + $0x2a8] sm:$0xff]  ;;  %v1436_v25 = vpack.c.bf16 %v180_v17, %v174_v16 }
  0x5e   :  { %v193_v22 = vld [vmem:[#allocation7 + $0x2d8] sm:$0xff]  ;;  %v195_v24 = vld [vmem:[#allocation7 + $0x2e8] sm:$0xff]  ;;  %v1500_v26 = vpack.c.bf16 %v182_v20, %v176_v18  ;;  %v186_v28 = vld [vmem:[#allocation7 + $0x2a0] sm:$0xff] }
  0x5f   :  { %1429 = vmatpush1.bf16.msra.mxu0 %v1428_v1  ;;  %v189_v23 = vld [vmem:[#allocation7 + $0x2b8] sm:$0xff]  ;;  %v1438_v27 = vpack.c.bf16 %v193_v22, %v187_v21  ;;  %v192_v29 = vld [vmem:[#allocation7 + $0x2d0] sm:$0xff]  ;;  %v194_v32 = vld [vmem:[#allocation7 + $0x2e0] sm:$0xff] }
  0x60   :  { %1493 = vmatpush1.bf16.msra.mxu1 %v1492_v2  ;;  %1431 = vmatprep.subr.bf16.mxu0 %v1430_v3  ;;  %v188_v30 = vld [vmem:[#allocation7 + $0x2b0] sm:$0xff]  ;;  %v1502_v31 = vpack.c.bf16 %v195_v24, %v189_v23  ;;  %v199_v33 = vld [vmem:[#allocation7 + $0x308] sm:$0xff]  ;;  %v205_v34 = vld [vmem:[#allocation7 + $0x338] sm:$0xff]  ;;  %v1440_v37 = vpack.c.bf16 %v192_v29, %v186_v28 }
  0x61   :  { %1495 = vmatprep.subr.bf16.mxu1 %v1494_v7  ;;  %v201_v35 = vld [vmem:[#allocation7 + $0x318] sm:$0xff]  ;;  %v207_v36 = vld [vmem:[#allocation7 + $0x348] sm:$0xff]  ;;  %v1504_v38 = vpack.c.bf16 %v194_v32, %v188_v30  ;;  %v1442_v39 = vpack.c.bf16 %v205_v34, %v199_v33  ;;  %v198_v40 = vld [vmem:[#allocation7 + $0x300] sm:$0xff] }
  0x62   :  { %v204_v41 = vld [vmem:[#allocation7 + $0x330] sm:$0xff]  ;;  %v1506_v43 = vpack.c.bf16 %v207_v36, %v201_v35  ;;  %v206_v44 = vld [vmem:[#allocation7 + $0x340] sm:$0xff]  ;;  %v211_v45 = vld [vmem:[#allocation7 + $0x368] sm:$0xff] }
  0x63   :  { %1433 = vmatpush1.bf16.msra.mxu0 %v1432_v13  ;;  %v200_v42 = vld [vmem:[#allocation7 + $0x310] sm:$0xff]  ;;  %v217_v46 = vld [vmem:[#allocation7 + $0x398] sm:$0xff]  ;;  %v219_v48 = vld [vmem:[#allocation7 + $0x3a8] sm:$0xff]  ;;  %v1444_v49 = vpack.c.bf16 %v204_v41, %v198_v40 }
  0x64   :  { %1497 = vmatpush1.bf16.msra.mxu1 %v1496_v14  ;;  %1435 = vmatprep.subr.bf16.mxu0 %v1434_v15  ;;  %v213_v47 = vld [vmem:[#allocation7 + $0x378] sm:$0xff]  ;;  %v1508_v50 = vpack.c.bf16 %v206_v44, %v200_v42  ;;  %v1446_v51 = vpack.c.bf16 %v217_v46, %v211_v45  ;;  %v210_v52 = vld [vmem:[#allocation7 + $0x360] sm:$0xff]  ;;  %v216_v53 = vld [vmem:[#allocation7 + $0x390] sm:$0xff] }
  0x65   :  { %1499 = vmatprep.subr.bf16.mxu1 %v1498_v19  ;;  %v212_v54 = vld [vmem:[#allocation7 + $0x370] sm:$0xff]  ;;  %v1510_v55 = vpack.c.bf16 %v219_v48, %v213_v47  ;;  %v218_v56 = vld [vmem:[#allocation7 + $0x3a0] sm:$0xff]  ;;  %v223_v57 = vld [vmem:[#allocation7 + $0x3c8] sm:$0xff]  ;;  %v1448_v61 = vpack.c.bf16 %v216_v53, %v210_v52 }
  0x66   :  { %v229_v58 = vld [vmem:[#allocation7 + $0x3f8] sm:$0xff]  ;;  %v231_v60 = vld [vmem:[#allocation7 + $0x408] sm:$0xff]  ;;  %v1512_v62 = vpack.c.bf16 %v218_v56, %v212_v54  ;;  %v222_v0 = vld [vmem:[#allocation7 + $0x3c0] sm:$0xff] }
  0x67   :  { %1437 = vmatpush1.bf16.msra.mxu0 %v1436_v25  ;;  %v225_v59 = vld [vmem:[#allocation7 + $0x3d8] sm:$0xff]  ;;  %v1450_v63 = vpack.c.bf16 %v229_v58, %v223_v57  ;;  %v228_v1 = vld [vmem:[#allocation7 + $0x3f0] sm:$0xff]  ;;  %v230_v4 = vld [vmem:[#allocation7 + $0x400] sm:$0xff] }
  0x68   :  { %1501 = vmatpush1.bf16.msra.mxu1 %v1500_v26  ;;  %1439 = vmatprep.subr.bf16.mxu0 %v1438_v27  ;;  %v224_v2 = vld [vmem:[#allocation7 + $0x3d0] sm:$0xff]  ;;  %v1514_v3 = vpack.c.bf16 %v231_v60, %v225_v59  ;;  %v235_v5 = vld [vmem:[#allocation7 + $0x428] sm:$0xff]  ;;  %v241_v6 = vld [vmem:[#allocation7 + $0x458] sm:$0xff]  ;;  %v1452_v9 = vpack.c.bf16 %v228_v1, %v222_v0 }
  0x69   :  { %1503 = vmatprep.subr.bf16.mxu1 %v1502_v31  ;;  %v237_v7 = vld [vmem:[#allocation7 + $0x438] sm:$0xff]  ;;  %v243_v8 = vld [vmem:[#allocation7 + $0x468] sm:$0xff]  ;;  %v1516_v10 = vpack.c.bf16 %v230_v4, %v224_v2  ;;  %v1454_v11 = vpack.c.bf16 %v241_v6, %v235_v5  ;;  %v234_v12 = vld [vmem:[#allocation7 + $0x420] sm:$0xff] }
  0x6a   :  { %v240_v13 = vld [vmem:[#allocation7 + $0x450] sm:$0xff]  ;;  %v1518_v15 = vpack.c.bf16 %v243_v8, %v237_v7  ;;  %v242_v16 = vld [vmem:[#allocation7 + $0x460] sm:$0xff]  ;;  %v247_v17 = vld [vmem:[#allocation7 + $0x488] sm:$0xff] }
  0x6b   :  { %1441 = vmatpush1.bf16.msra.mxu0 %v1440_v37  ;;  %v236_v14 = vld [vmem:[#allocation7 + $0x430] sm:$0xff]  ;;  %v253_v18 = vld [vmem:[#allocation7 + $0x4b8] sm:$0xff]  ;;  %v255_v20 = vld [vmem:[#allocation7 + $0x4c8] sm:$0xff]  ;;  %v1456_v21 = vpack.c.bf16 %v240_v13, %v234_v12 }
  0x6c   :  { %1505 = vmatpush1.bf16.msra.mxu1 %v1504_v38  ;;  %1443 = vmatprep.subr.bf16.mxu0 %v1442_v39  ;;  %v249_v19 = vld [vmem:[#allocation7 + $0x498] sm:$0xff]  ;;  %v1520_v22 = vpack.c.bf16 %v242_v16, %v236_v14  ;;  %v1458_v23 = vpack.c.bf16 %v253_v18, %v247_v17  ;;  %v246_v24 = vld [vmem:[#allocation7 + $0x480] sm:$0xff]  ;;  %v252_v25 = vld [vmem:[#allocation7 + $0x4b0] sm:$0xff] }
  0x6d   :  { %1507 = vmatprep.subr.bf16.mxu1 %v1506_v43  ;;  %v248_v26 = vld [vmem:[#allocation7 + $0x490] sm:$0xff]  ;;  %v1522_v27 = vpack.c.bf16 %v255_v20, %v249_v19  ;;  %v254_v28 = vld [vmem:[#allocation7 + $0x4c0] sm:$0xff]  ;;  %v259_v29 = vld [vmem:[#allocation7 + $0x4e8] sm:$0xff]  ;;  %v1460_v33 = vpack.c.bf16 %v252_v25, %v246_v24 }
  0x6e   :  { %v265_v30 = vld [vmem:[#allocation7 + $0x518] sm:$0xff]  ;;  %v267_v32 = vld [vmem:[#allocation7 + $0x528] sm:$0xff]  ;;  %v1524_v34 = vpack.c.bf16 %v254_v28, %v248_v26  ;;  %v258_v36 = vld [vmem:[#allocation7 + $0x4e0] sm:$0xff] }
  0x6f   :  { %1445 = vmatpush1.bf16.msra.mxu0 %v1444_v49  ;;  %v261_v31 = vld [vmem:[#allocation7 + $0x4f8] sm:$0xff]  ;;  %v1462_v35 = vpack.c.bf16 %v265_v30, %v259_v29  ;;  %v264_v37 = vld [vmem:[#allocation7 + $0x510] sm:$0xff]  ;;  %v266_v40 = vld [vmem:[#allocation7 + $0x520] sm:$0xff] }
  0x70   :  { %1509 = vmatpush1.bf16.msra.mxu1 %v1508_v50  ;;  %1447 = vmatprep.subr.bf16.mxu0 %v1446_v51  ;;  %v260_v38 = vld [vmem:[#allocation7 + $0x4f0] sm:$0xff]  ;;  %v1526_v39 = vpack.c.bf16 %v267_v32, %v261_v31  ;;  %v271_v41 = vld [vmem:[#allocation7 + $0x548] sm:$0xff]  ;;  %v277_v42 = vld [vmem:[#allocation7 + $0x578] sm:$0xff]  ;;  %v1464_v45 = vpack.c.bf16 %v264_v37, %v258_v36 }
  0x71   :  { %1511 = vmatprep.subr.bf16.mxu1 %v1510_v55  ;;  %v273_v43 = vld [vmem:[#allocation7 + $0x558] sm:$0xff]  ;;  %v279_v44 = vld [vmem:[#allocation7 + $0x588] sm:$0xff]  ;;  %v1528_v46 = vpack.c.bf16 %v266_v40, %v260_v38  ;;  %v1466_v47 = vpack.c.bf16 %v277_v42, %v271_v41  ;;  %v270_v48 = vld [vmem:[#allocation7 + $0x540] sm:$0xff] }
  0x72   :  { %v276_v49 = vld [vmem:[#allocation7 + $0x570] sm:$0xff]  ;;  %v1530_v51 = vpack.c.bf16 %v279_v44, %v273_v43  ;;  %v278_v52 = vld [vmem:[#allocation7 + $0x580] sm:$0xff]  ;;  %v283_v53 = vld [vmem:[#allocation7 + $0x5a8] sm:$0xff] }
  0x73   :  { %1449 = vmatpush1.bf16.msra.mxu0 %v1448_v61  ;;  %v272_v50 = vld [vmem:[#allocation7 + $0x550] sm:$0xff]  ;;  %v289_v54 = vld [vmem:[#allocation7 + $0x5d8] sm:$0xff]  ;;  %v291_v56 = vld [vmem:[#allocation7 + $0x5e8] sm:$0xff]  ;;  %v1468_v57 = vpack.c.bf16 %v276_v49, %v270_v48 }
  0x74   :  { %1513 = vmatpush1.bf16.msra.mxu1 %v1512_v62  ;;  %1451 = vmatprep.subr.bf16.mxu0 %v1450_v63  ;;  %v285_v55 = vld [vmem:[#allocation7 + $0x5b8] sm:$0xff]  ;;  %v1532_v58 = vpack.c.bf16 %v278_v52, %v272_v50  ;;  %v1470_v59 = vpack.c.bf16 %v289_v54, %v283_v53  ;;  %v282_v60 = vld [vmem:[#allocation7 + $0x5a0] sm:$0xff]  ;;  %v288_v61 = vld [vmem:[#allocation7 + $0x5d0] sm:$0xff] }
  0x75   :  { %1515 = vmatprep.subr.bf16.mxu1 %v1514_v3  ;;  %v284_v62 = vld [vmem:[#allocation7 + $0x5b0] sm:$0xff]  ;;  %v1534_v63 = vpack.c.bf16 %v291_v56, %v285_v55  ;;  %v290_v0 = vld [vmem:[#allocation7 + $0x5e0] sm:$0xff]  ;;  %v107_v1 = vld [vmem:[#allocation7 + $0x28] sm:$0xff]  ;;  %v1472_v3 = vpack.c.bf16 %v288_v61, %v282_v60 }
  0x76   :  { %v113_v2 = vld [vmem:[#allocation7 + $0x58] sm:$0xff]  ;;  %v1536_v4 = vpack.c.bf16 %v290_v0, %v284_v62  ;;  %v106_v6 = vld [vmem:[#allocation7 + $0x20] sm:$0xff]  ;;  %v112_v7 = vld [vmem:[#allocation7 + $0x50] sm:$0xff] }
  0x77   :  { %1453 = vmatpush1.bf16.msra.mxu0 %v1452_v9  ;;  %v1538_v5 = vpack.c.bf16 %v113_v2, %v107_v1  ;;  %v88_v9 = vld [vmem:[#allocation2] sm:$0xff]  ;;  %v1540_v14 = vpack.c.bf16 %v112_v7, %v106_v6  ;;  %v118_v18 = vld [vmem:[#allocation7 + $0x80] sm:$0xff]  ;;  %v131_v20 = vld [vmem:[#allocation7 + $0xe8] sm:$0xff] }
  0x78   :  { %1517 = vmatpush1.bf16.msra.mxu1 %v1516_v10  ;;  %1455 = vmatprep.subr.bf16.mxu0 %v1454_v11  ;;  %v119_v10 = vld [vmem:[#allocation7 + $0x88] sm:$0xff]  ;;  %v125_v11 = vld [vmem:[#allocation7 + $0xb8] sm:$0xff]  ;;  %v124_v19 = vld [vmem:[#allocation7 + $0xb0] sm:$0xff] }
  0x79   :  { %1519 = vmatprep.subr.bf16.mxu1 %v1518_v15  ;;  %v1542_v17 = vpack.c.bf16 %v125_v11, %v119_v10  ;;  %v130_v24 = vld [vmem:[#allocation7 + $0xe0] sm:$0xff]  ;;  %v136_v25 = vld [vmem:[#allocation7 + $0x110] sm:$0xff]  ;;  %v143_v26 = vld [vmem:[#allocation7 + $0x148] sm:$0xff] }
  0x7a   :  { %v1548_v28 = vpack.c.bf16 %v136_v25, %v130_v24  ;;  %v142_v30 = vld [vmem:[#allocation7 + $0x140] sm:$0xff]  ;;  %v148_v31 = vld [vmem:[#allocation7 + $0x170] sm:$0xff]  ;;  %v155_v32 = vld [vmem:[#allocation7 + $0x1a8] sm:$0xff] }
  0x7b   :  { %1457 = vmatpush1.bf16.msra.mxu0 %v1456_v21  ;;  %v137_v21 = vld [vmem:[#allocation7 + $0x118] sm:$0xff]  ;;  %v154_v36 = vld [vmem:[#allocation7 + $0x1a0] sm:$0xff]  ;;  %v160_v37 = vld [vmem:[#allocation7 + $0x1d0] sm:$0xff] }
  0x7c   :  { %1521 = vmatpush1.bf16.msra.mxu1 %v1520_v22  ;;  %1459 = vmatprep.subr.bf16.mxu0 %v1458_v23  ;;  %v1544_v22 = vpack.c.bf16 %v124_v19, %v118_v18  ;;  %v1546_v23 = vpack.c.bf16 %v137_v21, %v131_v20  ;;  %v167_v38 = vld [vmem:[#allocation7 + $0x208] sm:$0xff]  ;;  %v1556_v40 = vpack.c.bf16 %v160_v37, %v154_v36  ;;  %v166_v42 = vld [vmem:[#allocation7 + $0x200] sm:$0xff]  ;;  %v172_v43 = vld [vmem:[#allocation7 + $0x230] sm:$0xff] }
  0x7d   :  { %1523 = vmatprep.subr.bf16.mxu1 %v1522_v27  ;;  %v149_v27 = vld [vmem:[#allocation7 + $0x178] sm:$0xff]  ;;  %v179_v44 = vld [vmem:[#allocation7 + $0x268] sm:$0xff]  ;;  %v178_v48 = vld [vmem:[#allocation7 + $0x260] sm:$0xff] }
  0x7e   :  { %v1550_v29 = vpack.c.bf16 %v149_v27, %v143_v26  ;;  %v184_v49 = vld [vmem:[#allocation7 + $0x290] sm:$0xff]  ;;  %v191_v50 = vld [vmem:[#allocation7 + $0x2c8] sm:$0xff]  ;;  %v190_v54 = vld [vmem:[#allocation7 + $0x2c0] sm:$0xff] }
  0x7f   :  { %1461 = vmatpush1.bf16.msra.mxu0 %v1460_v33  ;;  %v161_v33 = vld [vmem:[#allocation7 + $0x1d8] sm:$0xff]  ;;  %v1564_v52 = vpack.c.bf16 %v184_v49, %v178_v48  ;;  %v196_v55 = vld [vmem:[#allocation7 + $0x2f0] sm:$0xff]  ;;  %v203_v56 = vld [vmem:[#allocation7 + $0x328] sm:$0xff] }
  0x80   :  { %1525 = vmatpush1.bf16.msra.mxu1 %v1524_v34  ;;  %1463 = vmatprep.subr.bf16.mxu0 %v1462_v35  ;;  %v1552_v34 = vpack.c.bf16 %v148_v31, %v142_v30  ;;  %v1554_v35 = vpack.c.bf16 %v161_v33, %v155_v32  ;;  %v202_v60 = vld [vmem:[#allocation7 + $0x320] sm:$0xff]  ;;  %v208_v61 = vld [vmem:[#allocation7 + $0x350] sm:$0xff]  ;;  %v215_v62 = vld [vmem:[#allocation7 + $0x388] sm:$0xff] }
  0x81   :  { %1527 = vmatprep.subr.bf16.mxu1 %v1526_v39  ;;  %v173_v39 = vld [vmem:[#allocation7 + $0x238] sm:$0xff]  ;;  %v1572_v0 = vpack.c.bf16 %v208_v61, %v202_v60  ;;  %v214_v2 = vld [vmem:[#allocation7 + $0x380] sm:$0xff]  ;;  %v239_v10 = vld [vmem:[#allocation7 + $0x448] sm:$0xff] }
  0x82   :  { %v1558_v41 = vpack.c.bf16 %v173_v39, %v167_v38  ;;  %v245_v11 = vld [vmem:[#allocation7 + $0x478] sm:$0xff]  ;;  %v250_v21 = vld [vmem:[#allocation7 + $0x4a0] sm:$0xff] }
  0x83   :  { %1465 = vmatpush1.bf16.msra.mxu0 %v1464_v45  ;;  %v185_v45 = vld [vmem:[#allocation7 + $0x298] sm:$0xff]  ;;  %v262_v27 = vld [vmem:[#allocation7 + $0x500] sm:$0xff] }
  0x84   :  { %1529 = vmatpush1.bf16.msra.mxu1 %v1528_v46  ;;  %1467 = vmatprep.subr.bf16.mxu0 %v1466_v47  ;;  %v1560_v46 = vpack.c.bf16 %v172_v43, %v166_v42  ;;  %v1562_v47 = vpack.c.bf16 %v185_v45, %v179_v44  ;;  %v257_v18 = vld [vmem:[#allocation7 + $0x4d8] sm:$0xff]  ;;  %v274_v33 = vld [vmem:[#allocation7 + $0x560] sm:$0xff]  ;;  %v512_v43 = vld [vmem:[%s2603_s4 + $0x18] sm:$0xff] }
  0x85   :  { %1531 = vmatprep.subr.bf16.mxu1 %v1530_v51  ;;  %v197_v51 = vld [vmem:[#allocation7 + $0x2f8] sm:$0xff]  ;;  %v286_v39 = vld [vmem:[#allocation7 + $0x5c0] sm:$0xff]  ;;  %v509_v44 = vld [vmem:[%s2603_s4] sm:$0xff] }
  0x86   :  { %v1566_v53 = vpack.c.bf16 %v197_v51, %v191_v50  ;;  %v269_v24 = vld [vmem:[#allocation7 + $0x538] sm:$0xff]  ;;  %v513_v50 = vld [vmem:[%s2603_s4 + $0x20] sm:$0xff]  ;;  %v515_v51 = vld [vmem:[%s2603_s4 + $0x30] sm:$0xff] }
  0x87   :  { %1469 = vmatpush1.bf16.msra.mxu0 %v1468_v57  ;;  %v209_v57 = vld [vmem:[#allocation7 + $0x358] sm:$0xff] }
  0x88   :  { %1533 = vmatpush1.bf16.msra.mxu1 %v1532_v58  ;;  %1471 = vmatprep.subr.bf16.mxu0 %v1470_v59  ;;  %v1568_v58 = vpack.c.bf16 %v196_v55, %v190_v54  ;;  %v1570_v59 = vpack.c.bf16 %v209_v57, %v203_v56  ;;  %v281_v30 = vld [vmem:[#allocation7 + $0x598] sm:$0xff]  ;;  %v1608_v54 = vpack.c.bf16 %v515_v51, %v513_v50  ;;  %v517_v56 = vld [vmem:[%s2603_s4 + $0x40] sm:$0xff]  ;;  %v519_v57 = vld [vmem:[%s2603_s4 + $0x50] sm:$0xff] }
  0x89   :  { %1535 = vmatprep.subr.bf16.mxu1 %v1534_v63  ;;  %v221_v63 = vld [vmem:[#allocation7 + $0x3b8] sm:$0xff]  ;;  %v1612_v60 = vpack.c.bf16 %v519_v57, %v517_v56 }
  0x8a   :  { %v1574_v1 = vpack.c.bf16 %v221_v63, %v215_v62  ;;  %v293_v36 = vld [vmem:[#allocation7 + $0x5f8] sm:$0xff]  ;;  %v521_v62 = vld [vmem:[%s2603_s4 + $0x60] sm:$0xff]  ;;  %v523_v63 = vld [vmem:[%s2603_s4 + $0x70] sm:$0xff] }
  0x8b   :  { %1473 = vmatpush1.bf16.msra.mxu0 %v1472_v3  ;;  %v220_v3 = vld [vmem:[#allocation7 + $0x3b0] sm:$0xff]  ;;  %v510_v42 = vld [vmem:[%s2603_s4 + $0x8] sm:$0xff] }
  0x8c   :  { %1537 = vmatpush1.bf16.msra.mxu1 %v1536_v4  ;;  %1539 = vmatprep.subr.bf16.mxu0 %v1538_v5  ;;  %v227_v4 = vld [vmem:[#allocation7 + $0x3e8] sm:$0xff]  ;;  %v233_v5 = vld [vmem:[#allocation7 + $0x418] sm:$0xff]  ;;  %v1576_v6 = vpack.c.bf16 %v220_v3, %v214_v2  ;;  %v1602_v45 = vpack.c.bf16 %v512_v43, %v510_v42  ;;  %v1616_v2 = vpack.c.bf16 %v523_v63, %v521_v62  ;;  %v551_v42 = vld [vmem:[%s2603_s4 + $0x150] sm:$0xff] }
  0x8d   :  { %v1578_v7 = vpack.c.bf16 %v233_v5, %v227_v4  ;;  %v525_v4 = vld [vmem:[%s2603_s4 + $0x80] sm:$0xff]  ;;  %v527_v5 = vld [vmem:[%s2603_s4 + $0x90] sm:$0xff]  ;;  %v554_v43 = vld [vmem:[%s2603_s4 + $0x168] sm:$0xff] }
  0x8e   :  { %1603 = vmatprep.subr.bf16.mxu1 %v1602_v45 }
  0xbf   :  { %v1792_v8 = vpop.permute.xlu0 %1791 }
  0xc0   :  { %v1794_v12 = vunpack.i.h.bf16 %v1792_v8  ;;  %v1793_v13 = vunpack.i.l.bf16 %v1792_v8  ;;  %v226_v8 = vld [vmem:[#allocation7 + $0x3e0] sm:$0xff] }
  0xc2   :  { %v98_v15 = vsel %vm97_vm0, %v1793_v13, %v1794_v12  ;;  %v2075_v16 = vsel %vm97_vm0, %v88_v9, %v1793_v13  ;;  %v232_v9 = vld [vmem:[#allocation7 + $0x410] sm:$0xff]  ;;  %v1582_v13 = vpack.c.bf16 %v245_v11, %v239_v10  ;;  %v531_v11 = vld [vmem:[%s2603_s4 + $0xb0] sm:$0xff] }
  0xc3   :  { %358 = vmatprep.mubr.f32.mxu0 %v98_v15  ;;  %429 = vmatprep.mubr.f32.mxu1 %v98_v15  ;;  %v1580_v12 = vpack.c.bf16 %v232_v9, %v226_v8  ;;  %v1620_v8 = vpack.c.bf16 %v527_v5, %v525_v4  ;;  %v529_v10 = vld [vmem:[%s2603_s4 + $0xa0] sm:$0xff]  ;;  %v572_v4 = vld [vmem:[%s2603_s4 + $0x1f8] sm:$0xff] }
  0xc4   :  { %359 = vmatmul.mubr.f32.vlgmr.msra.gmra.mrb[0].mxu0 %v2075_v16  ;;  %430 = vmatmul.mubr.f32.vlgmr.msra.gmra.mrb[0].mxu1 %v2075_v16 }
  0xc5   :  { %1541 = vmatpush1.bf16.msra.mxu0 %v1540_v14  ;;  %500 = vmatprep.mubr.f32.mxu0 %v98_v15  ;;  %v238_v14 = vld [vmem:[#allocation7 + $0x440] sm:$0xff]  ;;  %v244_v15 = vld [vmem:[#allocation7 + $0x470] sm:$0xff] }
  0xc6   :  { %1543 = vmatprep.subr.bf16.mxu0 %v1542_v17  ;;  %v251_v17 = vld [vmem:[#allocation7 + $0x4a8] sm:$0xff]  ;;  %v1584_v19 = vpack.c.bf16 %v244_v15, %v238_v14  ;;  %v1624_v14 = vpack.c.bf16 %v531_v11, %v529_v10  ;;  %v574_v10 = vld [vmem:[#allocation8] sm:$0xff]  ;;  %v573_v11 = vld [vmem:[#allocation5] sm:$0xff] }
  0xc7   :  { %v1586_v20 = vpack.c.bf16 %v257_v18, %v251_v17  ;;  %v533_v17 = vld [vmem:[%s2603_s4 + $0xc0] sm:$0xff]  ;;  %v535_v18 = vld [vmem:[%s2603_s4 + $0xd0] sm:$0xff] }
  0xc9   :  { %1545 = vmatpush1.bf16.msra.mxu0 %v1544_v22  ;;  %v256_v22 = vld [vmem:[#allocation7 + $0x4d0] sm:$0xff] }
  0xca   :  { %1547 = vmatprep.subr.bf16.mxu0 %v1546_v23  ;;  %v263_v23 = vld [vmem:[#allocation7 + $0x508] sm:$0xff]  ;;  %v1588_v25 = vpack.c.bf16 %v256_v22, %v250_v21  ;;  %v1628_v21 = vpack.c.bf16 %v535_v18, %v533_v17 }
  0xcb   :  { %v1590_v26 = vpack.c.bf16 %v269_v24, %v263_v23  ;;  %v537_v23 = vld [vmem:[%s2603_s4 + $0xe0] sm:$0xff]  ;;  %v539_v24 = vld [vmem:[%s2603_s4 + $0xf0] sm:$0xff] }
  0xcd   :  { %1549 = vmatpush1.bf16.msra.mxu0 %v1548_v28  ;;  %v268_v28 = vld [vmem:[#allocation7 + $0x530] sm:$0xff] }
  0xce   :  { %1551 = vmatprep.subr.bf16.mxu0 %v1550_v29  ;;  %v275_v29 = vld [vmem:[#allocation7 + $0x568] sm:$0xff]  ;;  %v1592_v31 = vpack.c.bf16 %v268_v28, %v262_v27  ;;  %v1632_v27 = vpack.c.bf16 %v539_v24, %v537_v23 }
  0xcf   :  { %v1594_v32 = vpack.c.bf16 %v281_v30, %v275_v29  ;;  %v541_v29 = vld [vmem:[%s2603_s4 + $0x100] sm:$0xff]  ;;  %v543_v30 = vld [vmem:[%s2603_s4 + $0x110] sm:$0xff] }
  0xd1   :  { %1553 = vmatpush1.bf16.msra.mxu0 %v1552_v34  ;;  %v280_v34 = vld [vmem:[#allocation7 + $0x590] sm:$0xff] }
  0xd2   :  { %1555 = vmatprep.subr.bf16.mxu0 %v1554_v35  ;;  %v287_v35 = vld [vmem:[#allocation7 + $0x5c8] sm:$0xff]  ;;  %v1596_v37 = vpack.c.bf16 %v280_v34, %v274_v33  ;;  %v1636_v33 = vpack.c.bf16 %v543_v30, %v541_v29  ;;  %v891_v29 = vld [vmem:[%s2606_s7 + $0x88] sm:$0xff]  ;;  %v786_v30 = vld [vmem:[%s2605_s6 + $0x80] sm:$0xff] }
  0xd3   :  { %v1598_v38 = vpack.c.bf16 %v293_v36, %v287_v35  ;;  %v545_v35 = vld [vmem:[%s2603_s4 + $0x120] sm:$0xff]  ;;  %v547_v36 = vld [vmem:[%s2603_s4 + $0x130] sm:$0xff] }
  0xd5   :  { %1557 = vmatpush1.bf16.msra.mxu0 %v1556_v40  ;;  %v292_v40 = vld [vmem:[#allocation7 + $0x5f0] sm:$0xff] }
  0xd6   :  { %1559 = vmatprep.subr.bf16.mxu0 %v1558_v41  ;;  %v1600_v41 = vpack.c.bf16 %v292_v40, %v286_v39  ;;  %v1640_v39 = vpack.c.bf16 %v547_v36, %v545_v35 }
  0xd9   :  { %1561 = vmatpush1.bf16.msra.mxu0 %v1560_v46  ;;  %v511_v46 = vld [vmem:[%s2603_s4 + $0x10] sm:$0xff] }
  0xda   :  { %1563 = vmatprep.subr.bf16.mxu0 %v1562_v47  ;;  %v516_v47 = vld [vmem:[%s2603_s4 + $0x38] sm:$0xff]  ;;  %v1604_v48 = vpack.c.bf16 %v511_v46, %v509_v44 }
  0xdb   :  { %v556_v44 = vld [vmem:[%s2603_s4 + $0x178] sm:$0xff] }
  0xdc   :  { %1605 = vmatpush1.bf16.msra.mxu1 %v1604_v48  ;;  %v1646_v46 = vpack.c.bf16 %v556_v44, %v554_v43  ;;  %v558_v48 = vld [vmem:[%s2603_s4 + $0x188] sm:$0xff]  ;;  %v789_v44 = vld [vmem:[%s2605_s6 + $0x98] sm:$0xff] }
  0xdd   :  { %1565 = vmatpush1.bf16.msra.mxu0 %v1564_v52  ;;  %v518_v52 = vld [vmem:[%s2603_s4 + $0x48] sm:$0xff] }
  0xde   :  { %1567 = vmatprep.subr.bf16.mxu0 %v1566_v53  ;;  %v520_v53 = vld [vmem:[%s2603_s4 + $0x58] sm:$0xff] }
  0xdf   :  { %v1610_v55 = vpack.c.bf16 %v520_v53, %v518_v52  ;;  %v557_v52 = vld [vmem:[%s2603_s4 + $0x180] sm:$0xff]  ;;  %v559_v53 = vld [vmem:[%s2603_s4 + $0x190] sm:$0xff] }
  0xe0   :  { %v1652_v56 = vpack.c.bf16 %v559_v53, %v557_v52  ;;  %v895_v52 = vld [vmem:[%s2606_s7 + $0xa8] sm:$0xff]  ;;  %v790_v53 = vld [vmem:[%s2605_s6 + $0xa0] sm:$0xff] }
  0xe1   :  { %1569 = vmatpush1.bf16.msra.mxu0 %v1568_v58  ;;  %v522_v58 = vld [vmem:[%s2603_s4 + $0x68] sm:$0xff] }
  0xe2   :  { %1571 = vmatprep.subr.bf16.mxu0 %v1570_v59  ;;  %v524_v59 = vld [vmem:[%s2603_s4 + $0x78] sm:$0xff] }
  0xe3   :  { %v1614_v61 = vpack.c.bf16 %v524_v59, %v522_v58  ;;  %v561_v58 = vld [vmem:[%s2603_s4 + $0x1a0] sm:$0xff]  ;;  %v563_v59 = vld [vmem:[%s2603_s4 + $0x1b0] sm:$0xff] }
  0xe4   :  { %v1656_v62 = vpack.c.bf16 %v563_v59, %v561_v58  ;;  %v879_v58 = vld [vmem:[%s2606_s7 + $0x28] sm:$0xff]  ;;  %v774_v59 = vld [vmem:[%s2605_s6 + $0x20] sm:$0xff] }
  0xe5   :  { %1573 = vmatpush1.bf16.msra.mxu0 %v1572_v0  ;;  %v526_v0 = vld [vmem:[%s2603_s4 + $0x88] sm:$0xff] }
  0xe6   :  { %1575 = vmatprep.subr.bf16.mxu0 %v1574_v1  ;;  %v528_v1 = vld [vmem:[%s2603_s4 + $0x98] sm:$0xff] }
  0xe7   :  { %v1618_v3 = vpack.c.bf16 %v528_v1, %v526_v0  ;;  %v565_v0 = vld [vmem:[%s2603_s4 + $0x1c0] sm:$0xff]  ;;  %v567_v1 = vld [vmem:[%s2603_s4 + $0x1d0] sm:$0xff] }
  0xe9   :  { %1577 = vmatpush1.bf16.msra.mxu0 %v1576_v6  ;;  %v530_v6 = vld [vmem:[%s2603_s4 + $0xa8] sm:$0xff] }
  0xea   :  { %1579 = vmatprep.subr.bf16.mxu0 %v1578_v7  ;;  %v532_v7 = vld [vmem:[%s2603_s4 + $0xb8] sm:$0xff] }
  0xeb   :  { %v1622_v9 = vpack.c.bf16 %v532_v7, %v530_v6  ;;  %v569_v6 = vld [vmem:[%s2603_s4 + $0x1e0] sm:$0xff]  ;;  %v571_v7 = vld [vmem:[%s2603_s4 + $0x1f0] sm:$0xff] }
  0xed   :  { %1581 = vmatpush1.bf16.msra.mxu0 %v1580_v12  ;;  %v534_v12 = vld [vmem:[%s2603_s4 + $0xc8] sm:$0xff] }
  0xee   :  { %1583 = vmatprep.subr.bf16.mxu0 %v1582_v13  ;;  %v536_v13 = vld [vmem:[%s2603_s4 + $0xd8] sm:$0xff] }
  0xef   :  { %v1626_v15 = vpack.c.bf16 %v536_v13, %v534_v12  ;;  %v1951_v12 = vmov 0.0  }
  0xf1   :  { %1585 = vmatpush1.bf16.msra.mxu0 %v1584_v19  ;;  %v538_v19 = vld [vmem:[%s2603_s4 + $0xe8] sm:$0xff] }
  0xf2   :  { %1587 = vmatprep.subr.bf16.mxu0 %v1586_v20  ;;  %v540_v20 = vld [vmem:[%s2603_s4 + $0xf8] sm:$0xff] }
  0xf3   :  { %v1630_v22 = vpack.c.bf16 %v540_v20, %v538_v19 }
  0xf5   :  { %1589 = vmatpush1.bf16.msra.mxu0 %v1588_v25  ;;  %v542_v25 = vld [vmem:[%s2603_s4 + $0x108] sm:$0xff] }
  0xf6   :  { %1591 = vmatprep.subr.bf16.mxu0 %v1590_v26  ;;  %v544_v26 = vld [vmem:[%s2603_s4 + $0x118] sm:$0xff] }
  0xf7   :  { %v1634_v28 = vpack.c.bf16 %v544_v26, %v542_v25 }
  0xf9   :  { %1593 = vmatpush1.bf16.msra.mxu0 %v1592_v31  ;;  %v546_v31 = vld [vmem:[%s2603_s4 + $0x128] sm:$0xff] }
  0xfa   :  { %1595 = vmatprep.subr.bf16.mxu0 %v1594_v32  ;;  %v548_v32 = vld [vmem:[%s2603_s4 + $0x138] sm:$0xff] }
  0xfb   :  { %v1638_v34 = vpack.c.bf16 %v548_v32, %v546_v31  ;;  %v787_v32 = vld [vmem:[%s2605_s6 + $0x88] sm:$0xff] }
  0xfc   :  { %v2307_v35 = vpack.c.bf16 %v787_v32, %v786_v30  ;;  %v778_v32 = vld [vmem:[%s2605_s6 + $0x40] sm:$0xff] }
  0xfd   :  { %1597 = vmatpush1.bf16.msra.mxu0 %v1596_v37  ;;  %v550_v37 = vld [vmem:[%s2603_s4 + $0x148] sm:$0xff] }
  0xfe   :  { %1599 = vmatprep.subr.bf16.mxu0 %v1598_v38  ;;  %v552_v38 = vld [vmem:[%s2603_s4 + $0x158] sm:$0xff] }
  0xff   :  { %v1642_v40 = vpack.c.bf16 %v552_v38, %v550_v37  ;;  %v770_v37 = vld [vmem:[%s2605_s6] sm:$0xff]  ;;  %v771_v38 = vld [vmem:[%s2605_s6 + $0x8] sm:$0xff] }
 0x101   :  { %1601 = vmatpush1.bf16.msra.mxu0 %v1600_v41  ;;  %v549_v41 = vld [vmem:[%s2603_s4 + $0x140] sm:$0xff] }
 0x102   :  { %v1644_v45 = vpack.c.bf16 %v551_v42, %v549_v41  ;;  %v893_v41 = vld [vmem:[%s2606_s7 + $0x98] sm:$0xff]  ;;  %v788_v42 = vld [vmem:[%s2605_s6 + $0x90] sm:$0xff] }
 0x104   :  { %501 = vmatmul.mubr.f32.vlgmr.msra.gmra.mrb[2].mxu0 %v2075_v16  ;;  %v514_v16 = vld [vmem:[%s2603_s4 + $0x28] sm:$0xff] }
 0x105   :  { %v1606_v49 = vpack.c.bf16 %v516_v47, %v514_v16  ;;  %v553_v16 = vld [vmem:[%s2603_s4 + $0x160] sm:$0xff]  ;;  %v555_v47 = vld [vmem:[%s2603_s4 + $0x170] sm:$0xff]  ;;  %644 = vmatprep.mubr.f32.mxu0 %v1951_v12 }
 0x106   :  { %v1648_v50 = vpack.c.bf16 %v555_v47, %v553_v16  ;;  %v2341_v16 = vpack.c.bf16 %v789_v44, %v788_v42  ;;  %v797_v44 = vld [vmem:[%s2605_s6 + $0xd8] sm:$0xff] }
 0x107   :  { %1607 = vmatprep.subr.bf16.mxu1 %v1606_v49  ;;  %v560_v49 = vld [vmem:[%s2603_s4 + $0x198] sm:$0xff] }
 0x108   :  { %1609 = vmatpush1.bf16.msra.mxu1 %v1608_v54  ;;  %v1650_v51 = vpack.c.bf16 %v560_v49, %v558_v48  ;;  %v562_v54 = vld [vmem:[%s2603_s4 + $0x1a8] sm:$0xff]  ;;  %v772_v48 = vld [vmem:[%s2605_s6 + $0x10] sm:$0xff]  ;;  %v773_v49 = vld [vmem:[%s2605_s6 + $0x18] sm:$0xff] }
 0x109   :  { %1611 = vmatprep.subr.bf16.mxu1 %v1610_v55  ;;  %v564_v55 = vld [vmem:[%s2603_s4 + $0x1b8] sm:$0xff] }
 0x10a   :  { %v1654_v57 = vpack.c.bf16 %v564_v55, %v562_v54  ;;  %v791_v54 = vld [vmem:[%s2605_s6 + $0xa8] sm:$0xff] }
 0x10c   :  { %1613 = vmatpush1.bf16.msra.mxu1 %v1612_v60  ;;  %v566_v60 = vld [vmem:[%s2603_s4 + $0x1c8] sm:$0xff] }
 0x10d   :  { %1615 = vmatprep.subr.bf16.mxu1 %v1614_v61  ;;  %v568_v61 = vld [vmem:[%s2603_s4 + $0x1d8] sm:$0xff] }
 0x10e   :  { %v1658_v63 = vpack.c.bf16 %v568_v61, %v566_v60  ;;  %v775_v60 = vld [vmem:[%s2605_s6 + $0x28] sm:$0xff] }
 0x110   :  { %1617 = vmatpush1.bf16.msra.mxu1 %v1616_v2  ;;  %v1660_v2 = vpack.c.bf16 %v567_v1, %v565_v0  ;;  %v897_v0 = vld [vmem:[%s2606_s7 + $0xb8] sm:$0xff] }
 0x111   :  { %1619 = vmatprep.subr.bf16.mxu1 %v1618_v3  ;;  %v570_v3 = vld [vmem:[%s2603_s4 + $0x1e8] sm:$0xff]  ;;  %s1952_s4 = smov 64  }
 0x112   :  { %v1662_v5 = vpack.c.bf16 %v572_v4, %v570_v3  ;;  %v792_v4 = vld [vmem:[%s2605_s6 + $0xb0] sm:$0xff] }
 0x114   :  { %1621 = vmatpush1.bf16.msra.mxu1 %v1620_v8  ;;  %v1664_v8 = vpack.c.bf16 %v571_v7, %v569_v6  ;;  %v880_v6 = vld [vmem:[%s2606_s7 + $0x30] sm:$0xff] }
 0x115   :  { %1623 = vmatprep.subr.bf16.mxu1 %v1622_v9  ;;  %v575_v9 = vld [vmem:[#allocation8 + $0x8] sm:$0xff] }
 0x116   :  { %580 = vmatprep.subr.mxu0 %v575_v9  ;;  %v881_v9 = vld [vmem:[%s2606_s7 + $0x38] sm:$0xff] }
 0x117   :  { %581 = vmatpush1.msra.mxu0 %v574_v10  ;;  %v776_v10 = vld [vmem:[%s2605_s6 + $0x30] sm:$0xff] }
 0x118   :  { %1625 = vmatpush1.bf16.msra.mxu1 %v1624_v14  ;;  %1270 = vmatmul.mubr.msk.f32.vlgmr.msra.gmra.mrb[4].mxu0 %vm576_vm1, %v573_v11  ;;  %v777_v11 = vld [vmem:[%s2605_s6 + $0x38] sm:$0xff] }
 0x119   :  { %1627 = vmatprep.subr.bf16.mxu1 %v1626_v15  ;;  %1667 = vmatprep.subr.bf16.mxu0 %v2307_v35 }
 0x11c   :  { %1629 = vmatpush1.bf16.msra.mxu1 %v1628_v21 }
 0x11d   :  { %1631 = vmatprep.subr.bf16.mxu1 %v1630_v22 }
 0x120   :  { %1633 = vmatpush1.bf16.msra.mxu1 %v1632_v27 }
 0x121   :  { %1635 = vmatprep.subr.bf16.mxu1 %v1634_v28  ;;  %v890_v28 = vld [vmem:[%s2606_s7 + $0x80] sm:$0xff] }
 0x122   :  { %v1698_v31 = vpack.c.bf16 %v891_v29, %v890_v28  ;;  %v882_v28 = vld [vmem:[%s2606_s7 + $0x40] sm:$0xff] }
 0x124   :  { %1637 = vmatpush1.bf16.msra.mxu1 %v1636_v33  ;;  %v874_v33 = vld [vmem:[%s2606_s7] sm:$0xff] }
 0x125   :  { %1639 = vmatprep.subr.bf16.mxu1 %v1638_v34  ;;  %v875_v34 = vld [vmem:[%s2606_s7 + $0x8] sm:$0xff] }
 0x126   :  { %v1700_v36 = vpack.c.bf16 %v875_v34, %v874_v33  ;;  %v779_v33 = vld [vmem:[%s2605_s6 + $0x48] sm:$0xff] }
 0x128   :  { %1641 = vmatpush1.bf16.msra.mxu1 %v1640_v39  ;;  %v892_v39 = vld [vmem:[%s2606_s7 + $0x90] sm:$0xff] }
 0x129   :  { %1643 = vmatprep.subr.bf16.mxu1 %v1642_v40  ;;  %v2322_v40 = vpack.c.bf16 %v771_v38, %v770_v37  ;;  %v1702_v43 = vpack.c.bf16 %v893_v41, %v892_v39  ;;  %v2441_v37 = vpack.c.bf16 %v779_v33, %v778_v32  ;;  %v900_v38 = vld [vmem:[%s2606_s7 + $0xd0] sm:$0xff]  ;;  %v901_v39 = vld [vmem:[%s2606_s7 + $0xd8] sm:$0xff] }
 0x12a   :  { %v1718_v42 = vpack.c.bf16 %v901_v39, %v900_v38 }
 0x12b   :  { %1669 = vmatpush3.bf16.msra.mxu0 %v2322_v40 }
 0x12c   :  { %1645 = vmatpush1.bf16.msra.mxu1 %v1644_v45  ;;  %v876_v45 = vld [vmem:[%s2606_s7 + $0x10] sm:$0xff]  ;;  %1671 = vmatprep.subr.bf16.mxu0 %v2341_v16 }
 0x12d   :  { %1647 = vmatprep.subr.bf16.mxu1 %v1646_v46  ;;  %v877_v46 = vld [vmem:[%s2606_s7 + $0x18] sm:$0xff] }
 0x12e   :  { %v1704_v47 = vpack.c.bf16 %v877_v46, %v876_v45  ;;  %v884_v45 = vld [vmem:[%s2606_s7 + $0x50] sm:$0xff] }
 0x130   :  { %1649 = vmatpush1.bf16.msra.mxu1 %v1648_v50  ;;  %v894_v50 = vld [vmem:[%s2606_s7 + $0xa0] sm:$0xff] }
 0x131   :  { %1651 = vmatprep.subr.bf16.mxu1 %v1650_v51  ;;  %v2352_v51 = vpack.c.bf16 %v773_v49, %v772_v48  ;;  %v1706_v55 = vpack.c.bf16 %v895_v52, %v894_v50  ;;  %v885_v48 = vld [vmem:[%s2606_s7 + $0x58] sm:$0xff]  ;;  %v780_v49 = vld [vmem:[%s2605_s6 + $0x50] sm:$0xff] }
 0x132   :  { %v781_v50 = vld [vmem:[%s2605_s6 + $0x58] sm:$0xff] }
 0x133   :  { %1673 = vmatpush3.bf16.msra.mxu0 %v2352_v51 }
 0x134   :  { %1653 = vmatpush1.bf16.msra.mxu1 %v1652_v56  ;;  %v2364_v56 = vpack.c.bf16 %v791_v54, %v790_v53  ;;  %v1720_v53 = vpack.c.bf16 %v885_v48, %v884_v45  ;;  %v2471_v54 = vpack.c.bf16 %v781_v50, %v780_v49  ;;  %v1161_v45 = vld [vmem:[%s2608_s9 + $0x8] sm:$0xff]  ;;  %v1163_v48 = vld [vmem:[%s2608_s9 + $0x18] sm:$0xff] }
 0x135   :  { %1655 = vmatprep.subr.bf16.mxu1 %v1654_v57  ;;  %v878_v57 = vld [vmem:[%s2606_s7 + $0x20] sm:$0xff] }
 0x136   :  { %v1708_v61 = vpack.c.bf16 %v879_v58, %v878_v57  ;;  %1675 = vmatprep.subr.bf16.mxu0 %v2364_v56  ;;  %v902_v57 = vld [vmem:[%s2606_s7 + $0xe0] sm:$0xff]  ;;  %v903_v58 = vld [vmem:[%s2606_s7 + $0xe8] sm:$0xff] }
 0x138   :  { %1657 = vmatpush1.bf16.msra.mxu1 %v1656_v62  ;;  %v2379_v62 = vpack.c.bf16 %v775_v60, %v774_v59  ;;  %v798_v59 = vld [vmem:[%s2605_s6 + $0xe0] sm:$0xff] }
 0x139   :  { %1659 = vmatprep.subr.bf16.mxu1 %v1658_v63  ;;  %v896_v63 = vld [vmem:[%s2606_s7 + $0xb0] sm:$0xff] }
 0x13a   :  { %1677 = vmatpush3.bf16.msra.mxu0 %v2379_v62  ;;  %v1710_v3 = vpack.c.bf16 %v897_v0, %v896_v63  ;;  %v799_v63 = vld [vmem:[%s2605_s6 + $0xe8] sm:$0xff]  ;;  %v886_v0 = vld [vmem:[%s2606_s7 + $0x60] sm:$0xff] }
 0x13c   :  { %1661 = vmatpush1.bf16.msra.mxu1 %v1660_v2 }
 0x13d   :  { %1663 = vmatprep.subr.bf16.mxu1 %v1662_v5  ;;  %v793_v5 = vld [vmem:[%s2605_s6 + $0xb8] sm:$0xff] }
 0x140   :  { %1665 = vmatpush1.bf16.msra.mxu1 %v1664_v8  ;;  %v2399_v8 = vpack.c.bf16 %v793_v5, %v792_v4  ;;  %v782_v4 = vld [vmem:[%s2605_s6 + $0x60] sm:$0xff]  ;;  %v783_v5 = vld [vmem:[%s2605_s6 + $0x68] sm:$0xff] }
 0x141   :  { %1699 = vmatprep.subr.bf16.mxu1 %v1698_v31  ;;  %v883_v31 = vld [vmem:[%s2606_s7 + $0x48] sm:$0xff] }
 0x142   :  { %1679 = vmatprep.subr.bf16.mxu0 %v2399_v8 }
 0x197   :  { %v360_v13 = vpop.f32.mrb[0].mxu0  ;;  %v2273_v14 = vpop.f32.mrb[0].mxu1 }
 0x198   :  { %v362_v15 = vpop.f32.mrb[1].mxu0  ;;  %v2275_v17 = vpop.f32.mrb[1].mxu1 }
 0x1d7   :  { %v502_v18 = vpop.f32.mrb[2].mxu0 }
 0x1d8   :  { %v507_v19 = vmul.f32 %v502_v18, %v360_v13  ;;  %v504_v20 = vpop.f32.mrb[3].mxu0  ;;  %v1712_v13 = vpack.c.bf16 %v881_v9, %v880_v6  ;;  %v904_v6 = vld [vmem:[%s2606_s7 + $0xf0] sm:$0xff]  ;;  %v905_v9 = vld [vmem:[%s2606_s7 + $0xf8] sm:$0xff] }
 0x1d9   :  { %v508_v21 = vmul.f32 %v504_v20, %v362_v15  ;;  %v2410_v15 = vpack.c.bf16 %v777_v11, %v776_v10  ;;  %v898_v20 = vld [vmem:[%s2606_s7 + $0xc0] sm:$0xff]  ;;  %v800_v10 = vld [vmem:[%s2605_s6 + $0xf0] sm:$0xff]  ;;  %v1726_v11 = vpack.c.bf16 %v905_v9, %v904_v6 }
 0x1db   :  { %715 = vmatprep.mubr.f32.mxu1 %v508_v21  ;;  %1681 = vmatpush3.bf16.msra.mxu0 %v2410_v15  ;;  %v899_v21 = vld [vmem:[%s2606_s7 + $0xc8] sm:$0xff] }
 0x1dc   :  { %716 = vmatmul.mubr.f32.vlgmr.msra.gmra.mrb[2].mxu1 %v507_v19 }
 0x1dd   :  { %1701 = vmatpush3.bf16.msra.mxu1 %v1700_v36  ;;  %v1716_v36 = vpack.c.bf16 %v883_v31, %v882_v28 }
 0x1de   :  { %1703 = vmatprep.subr.bf16.mxu1 %v1702_v43  ;;  %v796_v43 = vld [vmem:[%s2605_s6 + $0xd0] sm:$0xff] }
 0x1e1   :  { %1705 = vmatpush3.bf16.msra.mxu1 %v1704_v47  ;;  %v2460_v47 = vpack.c.bf16 %v797_v44, %v796_v43  ;;  %v1160_v44 = vld [vmem:[%s2608_s9] sm:$0xff] }
 0x1e2   :  { %1707 = vmatprep.subr.bf16.mxu1 %v1706_v55 }
 0x1e5   :  { %1709 = vmatpush3.bf16.msra.mxu1 %v1708_v61  ;;  %v1722_v61 = vpack.c.bf16 %v903_v58, %v902_v57 }
 0x1e6   :  { %1711 = vmatprep.subr.bf16.mxu1 %v1710_v3 }
 0x1e9   :  { %1713 = vmatpush3.bf16.msra.mxu1 %v1712_v13  ;;  %v801_v13 = vld [vmem:[%s2605_s6 + $0xf8] sm:$0xff] }
 0x1eb   :  { %v646_v22 = vpop.f32.mrb[4].mxu0 }
 0x1ec   :  { %v648_v23 = vpop.f32.mrb[5].mxu0 }
 0x2af   :  { %v717_v24 = vpop.f32.mrb[2].mxu1 }
 0x2b0   :  { %v2277_v25 = vadd.f32 %v717_v24, %v646_v22  ;;  %v719_v26 = vpop.f32.mrb[3].mxu1  ;;  %v794_v24 = vld [vmem:[%s2605_s6 + $0xc0] sm:$0xff] }
 0x2b1   :  { %v2279_v27 = vadd.f32 %v719_v26, %v648_v23  ;;  %v1714_v23 = vpack.c.bf16 %v899_v21, %v898_v20  ;;  %v795_v26 = vld [vmem:[%s2605_s6 + $0xc8] sm:$0xff]  ;;  %v1694_v20 = vpack.c.bf16 %v801_v13, %v800_v10 }
 0x2b2   :  { %727 = vrot.lane.b32.xlu1 %v2277_v25, %s1952_s4  ;;  %723 = vrot.lane.b32.xlu0 %v2277_v25, %s1953_s18  ;;  %v2429_v30 = vpack.c.bf16 %v795_v26, %v794_v24 }
 0x2b3   :  { %1715 = vmatprep.subr.bf16.mxu1 %v1714_v23  ;;  %v785_v23 = vld [vmem:[%s2605_s6 + $0x78] sm:$0xff] }
 0x2b4   :  { %1683 = vmatprep.subr.bf16.mxu0 %v2429_v30  ;;  %1717 = vmatpush3.bf16.msra.mxu1 %v1716_v36 }
 0x2b5   :  { %1685 = vmatpush3.bf16.msra.mxu0 %v2441_v37  ;;  %1719 = vmatprep.subr.bf16.mxu1 %v1718_v42 }
 0x2b6   :  { %731 = vrot.lane.b32.xlu1 %v2277_v25, %s1950_s5  ;;  %737 = vrot.lane.b32.xlu0 %v2279_v27, %s1953_s18 }
 0x2b7   :  { %1687 = vmatprep.subr.bf16.mxu0 %v2460_v47 }
 0x2b8   :  { %1721 = vmatpush3.bf16.msra.mxu1 %v1720_v53 }
 0x2b9   :  { %1689 = vmatpush3.bf16.msra.mxu0 %v2471_v54  ;;  %1723 = vmatprep.subr.bf16.mxu1 %v1722_v61 }
 0x2ba   :  { %741 = vrot.lane.b32.xlu1 %v2279_v27, %s1952_s4  ;;  %745 = vrot.lane.b32.xlu0 %v2279_v27, %s1950_s5 }
 0x324   :  { %v728_v1 = vpop.permute.xlu1 %727  ;;  %v724_v2 = vpop.permute.xlu0 %723 }
 0x325   :  { %v726_v7 = vmax.f32 %v2277_v25, %v724_v2  ;;  %v1690_v2 = vpack.c.bf16 %v799_v63, %v798_v59 }
 0x327   :  { %v730_v18 = vmax.f32 %v726_v7, %v728_v1  ;;  %v887_v1 = vld [vmem:[%s2606_s7 + $0x68] sm:$0xff]  ;;  %v1692_v7 = vpack.c.bf16 %v783_v5, %v782_v4  ;;  %1691 = vmatprep.subr.bf16.mxu0 %v1690_v2 }
 0x328   :  { %v732_v19 = vpop.permute.xlu1 %731  ;;  %v738_v29 = vpop.permute.xlu0 %737  ;;  %v1724_v3 = vpack.c.bf16 %v887_v1, %v886_v0 }
 0x329   :  { %v734_v22 = vmax.f32 %v730_v18, %v732_v19  ;;  %v888_v18 = vld [vmem:[%s2606_s7 + $0x70] sm:$0xff]  ;;  %v889_v19 = vld [vmem:[%s2606_s7 + $0x78] sm:$0xff]  ;;  %1693 = vmatpush3.bf16.msra.mxu0 %v1692_v7 }
 0x32a   :  { %1725 = vmatpush3.bf16.msra.mxu1 %v1724_v3  ;;  %v1728_v21 = vpack.c.bf16 %v889_v19, %v888_v18  ;;  %1695 = vmatprep.subr.bf16.mxu0 %v1694_v20 }
 0x32b   :  { %v735_v34 = vmax.f32 %v734_v22, %v2279_v27  ;;  %v784_v22 = vld [vmem:[%s2605_s6 + $0x70] sm:$0xff]  ;;  %1727 = vmatprep.subr.bf16.mxu1 %v1726_v11 }
 0x32c   :  { %v742_v46 = vpop.permute.xlu1 %741  ;;  %v746_v55 = vpop.permute.xlu0 %745  ;;  %v1696_v24 = vpack.c.bf16 %v785_v23, %v784_v22 }
 0x32d   :  { %v740_v41 = vmax.f32 %v735_v34, %v738_v29 }
 0x32e   :  { %1729 = vmatpush3.bf16.msra.mxu1 %v1728_v21  ;;  %1697 = vmatpush3.bf16.msra.mxu0 %v1696_v24 }
 0x32f   :  { %v744_v52 = vmax.f32 %v740_v41, %v742_v46  ;;  %1737 = vmatprep.subr.bf16.mxu1 %v2307_v35  ;;  %v1769_v46 = vpack.c.bf16 %v1161_v45, %v1160_v44 }
 0x331   :  { %v748_v60 = vmax.f32 %v744_v52, %v746_v55 }
 0x333   :  { %753 = vrot.lane.b32.xlu0 %v748_v60, %s1952_s4  ;;  %750 = vrot.lane.b32.xlu1 %v748_v60, %s1950_s5 }
 0x337   :  { %756 = vrot.lane.b32.xlu1 %v748_v60, %s1953_s18 }
 0x3a5   :  { %v751_v26 = vpop.permute.xlu1 %750  ;;  %v754_v28 = vpop.permute.xlu0 %753 }
 0x3a6   :  { %v759_v29 = vsel %vm97_vm0, %v748_v60, %v751_v26 }
 0x3a7   :  { %v761_v31 = vsel %vm760_vm2, %v759_v29, %v754_v28 }
 0x3a9   :  { %v757_v32 = vpop.permute.xlu1 %756 }
 0x3aa   :  { %v763_v33 = vsel %vm762_vm3, %v761_v31, %v757_v32 }
 0x3ab   :  { %v764_v34 = vsub.f32 %v2277_v25, %v763_v33  ;;  %v765_v36 = vsub.f32 %v2279_v27, %v763_v33  ;;  %v976_v25 = vld [vmem:[%s2607_s8] sm:$0xff]  ;;  %v977_v27 = vld [vmem:[%s2607_s8 + $0x8] sm:$0xff] }
 0x3ad   :  { %v766_v38 = vmul.f32 1.442695, %v764_v34  ;;  %v768_v39 = vmul.f32 1.442695, %v765_v36 }
 0x3af   :  { %1795 = vpow2.f32 %v766_v38 }
 0x3b0   :  { %1797 = vpow2.f32 %v768_v39 }
 0x3b9   :  { %v1796_v41 = vpop.eup %1795 }
 0x3ba   :  { %v1798_v42 = vpop.eup %1797 }
 0x3bb   :  { %866 = vmatprep.mubr.f32.mxu0 %v1798_v42  ;;  %970 = vmatprep.mubr.f32.mxu1 %v1798_v42  ;;  %v1056_v35 = vmul.f32 %v1798_v42, %v2275_v17  ;;  %v1055_v17 = vmul.f32 %v1796_v41, %v2273_v14  ;;  %v979_v14 = vld [vmem:[%s2607_s8 + $0x18] sm:$0xff] }
 0x3bc   :  { %867 = vmatmul.mubr.f32.vlgmr.msra.gmra.mrb[6].mxu0 %v1796_v41  ;;  %971 = vmatmul.mubr.f32.vlgmr.msra.gmra.mrb[4].mxu1 %v1796_v41 }
 0x3bd   :  { %1739 = vmatpush3.bf16.msra.mxu1 %v2322_v40  ;;  %1153 = vmatprep.mubr.f32.mxu1 %v1056_v35  ;;  %v978_v40 = vld [vmem:[%s2607_s8 + $0x10] sm:$0xff] }
 0x3be   :  { %1741 = vmatprep.subr.bf16.mxu1 %v2341_v16  ;;  %v1954_v16 = vmov 0.0|0.0   ;;  %1396 = vmatprep.mubr.msk.f32.mxu0 %vm1955_vm4, %v1951_v12 }
 0x3bf   :  { %1730 = vmatprep.subr.bf16.mxu0 %v1954_v16 }
 0x3c1   :  { %1743 = vmatpush3.bf16.msra.mxu1 %v2352_v51  ;;  %v1731_v51 = vpack.c.bf16 %v977_v27, %v976_v25 }
 0x3c2   :  { %1745 = vmatprep.subr.bf16.mxu1 %v2364_v56  ;;  %v1734_v56 = vpack.c.bf16 %v979_v14, %v978_v40 }
 0x3c3   :  { %1732 = vmatpush3.bf16.msra.mxu0 %v1731_v51 }
 0x3c4   :  { %1733 = vmatprep.subr.bf16.mxu0 %v1954_v16 }
 0x3c5   :  { %1747 = vmatpush3.bf16.msra.mxu1 %v2379_v62 }
 0x3c6   :  { %1749 = vmatprep.subr.bf16.mxu1 %v2399_v8 }
 0x3c7   :  { %1735 = vmatpush3.bf16.msra.mxu0 %v1734_v56 }
 0x3c8   :  { %1768 = vmatprep.subr.bf16.mxu0 %v1954_v16 }
 0x3c9   :  { %1751 = vmatpush3.bf16.msra.mxu1 %v2410_v15 }
 0x3ca   :  { %1753 = vmatprep.subr.bf16.mxu1 %v2429_v30 }
 0x3cd   :  { %1755 = vmatpush3.bf16.msra.mxu1 %v2441_v37 }
 0x3ce   :  { %1757 = vmatprep.subr.bf16.mxu1 %v2460_v47  ;;  %v1162_v47 = vld [vmem:[%s2608_s9 + $0x10] sm:$0xff]  ;;  %s1890_s9 = scalar_lea.vmem %s1256_s28, 128 }
 0x3cf   :  { %v1772_v50 = vpack.c.bf16 %v1163_v48, %v1162_v47  ;;  %p1891_p4 = scmp.ne.s32.totalorder %s1256_s28, %s1890_s9  ;;  %p1896_p6 = scmp.lt.s32.totalorder %s1890_s9, %s1890_s9 }
 0x3d1   :  { %1759 = vmatpush3.bf16.msra.mxu1 %v2471_v54  ;;  %p1897_p7 = por %p1896_p6, %p1895_p5 }
 0x3d2   :  { %1761 = vmatprep.subr.bf16.mxu1 %v1690_v2 }
 0x3d3   :  { %p1898_p8 = pnand %p1897_p7, %p1891_p4 }
 0x3d5   :  { %1763 = vmatpush3.bf16.msra.mxu1 %v1692_v7 }
 0x3d6   :  { %1765 = vmatprep.subr.bf16.mxu1 %v1694_v20 }
 0x3d9   :  { %1767 = vmatpush3.bf16.msra.mxu1 %v1696_v24 }
 0x3dc   :  { %1154 = vmatmul.mubr.f32.vlgmr.msra.gmra.mrb[6].mxu1 %v1055_v17 }
 0x48f   :  { %v1305_v62 = vpop.f32.mrb[6].mxu0  ;;  %v1340_v8 = vpop.f32.mrb[4].mxu1 }
 0x490   :  { %v1306_v15 = vpop.f32.mrb[7].mxu0  ;;  %v1341_v30 = vpop.f32.mrb[5].mxu1 }
 0x491   :  { %v1307_v37 = vadd.f32 %v1306_v15, %v1305_v62  ;;  %v1342_v43 = vadd.f32 %v1341_v30, %v1340_v8 }
 0x493   :  { %1799 = vrcp.f32 %v1307_v37 }
 0x49d   :  { %v1800_v49 = vpop.eup %1799 }
 0x49e   :  { %1397 = vmatmul.mubr.msk.f32.vlgmr.msra.gmra.mrb[8].mxu0 %vm97_vm0, %v1800_v49 }
 0x49f   :  { %1770 = vmatpush3.bf16.msra.mxu0 %v1769_v46  ;;  %1407 = vmatprep.mubr.msk.f32.mxu0 %vm1955_vm4, %v1951_v12 }
 0x4a0   :  { %1771 = vmatprep.subr.bf16.mxu0 %v1954_v16 }
 0x4a3   :  { %1773 = vmatpush3.bf16.msra.mxu0 %v1772_v50 }
 0x4af   :  { %v1380_v52 = vpop.f32.mrb[6].mxu1 }
 0x4b0   :  { %v1381_v53 = vpop.f32.mrb[7].mxu1 }
 0x4b1   :  { %v1382_v54 = vadd.f32 %v1381_v53, %v1380_v52 }
 0x4b3   :  { %v1159_v55 = vmul.f32 %v1800_v49, %v1382_v54 }
 0x4b5   :  { %1408 = vmatmul.mubr.msk.f32.vlgmr.msra.gmra.mrb[10].mxu0 %vm97_vm0, %v1159_v55 }
 0x571   :  { %v1049_v57 = vpop.f32.mrb[8].mxu0 }
 0x572   :  { %v1053_v58 = vmul.f32 %v1342_v43, %v1049_v57  ;;  %v1398_v59 = vpop.f32.mrb[9].mxu0 }
 0x574   :  { %1054 = vst.msk [vmem:[#allocation11] sm:$0xff] %vm97_vm0, %v1053_v58 }
 0x575   :  { %1901 = shalt.err (!%p1898_p8)
}
 0x576   :  { %s1902_s30 = scalar_lea.hbm %s2610_s11, 128 }
 0x577   :  { %p1903_p9 = scmp.ne.s32.totalorder %s2610_s11, %s1902_s30  ;;  %p1906_p10 = scmp.lt.u32.totalorder %s1902_s30, %s2610_s11 }
 0x579   :  { %p1908_p11 = pnand %p1906_p10, %p1903_p9 }
 0x57b   :  { %1911 = shalt.err (!%p1908_p11)
}
 0x57c   :  { %1258 = dma.vmem_to_hbm [thread:$0]  %s1256_s28, 128, %s2610_s11, [#allocation12]   ;;  %v1801_v60 = vld [vmem:[#allocation2] sm:$0xff] }
 0x57d   :  { %s1957_s14 = smov [#allocation10]  }
 0x57e   :  { %s1245_s6 = sshll.u32 %s1957_s14, 4  ;;  %s1246_s6 = int_to_ptr.vmem [resolvable:$true] %s1245_s6 }
 0x57f   :  { %s1912_s7 = scalar_lea.vmem %s1246_s6, 128  ;;  %p1917_p13 = scmp.lt.s32.totalorder %s1246_s6, %s1246_s6 }
 0x580   :  { %p1913_p12 = scmp.ne.s32.totalorder %s1246_s6, %s1912_s7  ;;  %p1918_p0 = scmp.lt.s32.totalorder %s1912_s7, %s1912_s7 }
 0x582   :  { %p1919_p1 = por %p1918_p0, %p1917_p13 }
 0x584   :  { %p1920_p2 = pnand %p1919_p1, %p1913_p12 }
 0x588   :  { %v1233_v12 = vpop.f32.mrb[10].mxu0 }
 0x589   :  { %v1234_v61 = vadd.f32 %v1801_v60, %v1233_v12  ;;  %v1409_v63 = vpop.f32.mrb[11].mxu0 }
 0x58b   :  { %v1237_v0 = vmul.f32 0.5, %v1234_v61 }
 0x58d   :  { %1238 = vst.msk [vmem:[#allocation10] sm:$0xff] %vm97_vm0, %v1237_v0 }
 0x58e   :  { %1923 = shalt.err (!%p1920_p2)
}
 0x58f   :  { %s1924_s11 = scalar_lea.hbm %s2609_s10, 128 }
 0x590   :  { %p1925_p3 = scmp.ne.s32.totalorder %s2609_s10, %s1924_s11  ;;  %p1928_p4 = scmp.lt.u32.totalorder %s1924_s11, %s2609_s10 }
 0x592   :  { %p1930_p5 = pnand %p1928_p4, %p1925_p3 }
 0x594   :  { %1933 = shalt.err (!%p1930_p5)
}
 0x595   :  { %1248 = dma.vmem_to_hbm [thread:$0]  %s1246_s6, 128, %s2609_s10, [#allocation4]  }
 0x596   :  { %1940 = dma.done.wait [#allocation4], 128  }
 0x597   :  { %1941 = vsyncadd [#allocation4], 4294967168 }
 0x598   :  { %1942 = dma.done.wait [#allocation12], 128  }
 0x599   :  { %1943 = vsyncadd [#allocation12], 4294967168 }
 0x59a   :  { %1265 = vsyncpa [#allocation3], 1 }
 0x59b   :  { %1266 = vsyncpa [#allocation6], 1 }
 0x59c   :  { %1267 = vsyncpa [#allocation9], 1 }
 0x59d   :  { %1268 = vsyncpa [#allocation4], 1 }
 0x59e   :  { %1269 = vsyncpa [#allocation12], 1 }

</bundles_post_ra>
